<compile_context>
chip_gen: v7x
topology: tpu7x:2x2x1
jax: 0.10.0
libtpu: 0.0.40
codegen_flags: <defaults>
</compile_context>

<pallas_src>
import jax
import jax.numpy as jnp
from jax import lax
from jax.experimental import pallas as pl
from jax.experimental.pallas import tpu as pltpu

CONV_KERNEL_SIZE = 21


def _conv1d_same_kernel(x_ref, w_ref, b_ref, o_ref, xp_ref):
    """Single grid step handling all B = N*H rows at once.

    x_ref : (B, W, C)          unpadded input rows (row = one (n, h) pair)
    w_ref : (K, C, C)          weight[k] maps C_in -> C_out (compute dtype)
    b_ref : (1, C)             bias (float32)
    o_ref : (C, B*W)           lane-dense transposed output
    xp_ref: (B, W + K - 1, C)  VMEM scratch: zero-padded copy of x
    """
    B, W, C = x_ref.shape
    K = w_ref.shape[0]
    pad = K // 2
    M = B * W
    mxu_dtype = w_ref.dtype

    # Fused zero padding: pre-zero the scratch, copy the payload into the
    # middle of the W axis (no padded array ever materializes in HBM).
    xp_ref[...] = jnp.zeros_like(xp_ref)
    xp_ref[:, pad:pad + W, :] = x_ref[...]

    # Bias folded into the accumulator init (hoisted cast, no final add).
    acc = jnp.broadcast_to(b_ref[...].astype(jnp.float32), (M, C))

    # K taps -> K MXU matmuls, each streaming the full M = B*W row batch.
    for k in range(K):
        slab = xp_ref[:, k:k + W, :].reshape(M, C)          # shifted window
        acc = acc + jnp.dot(slab.astype(mxu_dtype), w_ref[k],
                            preferred_element_type=jnp.float32)

    # Store transposed so the minor (lane) axis is B*W = 128 -> unmasked
    # vector stores instead of C = 32-wide masked partial stores.
    o_ref[...] = acc.T.astype(o_ref.dtype)


def subsampling_layer_forward(x_nchw, weight, bias, *, compute_dtype=None):
    """Forward of SubSamplingLayer: Conv2d(C, C, kernel=(1, K), padding=(0, K//2)).

    x_nchw: (N, C, H, W)
    weight: (C_out, C_in, 1, K)   (PyTorch Conv2d weight layout)
    bias:   (C_out,)
    compute_dtype: optional dtype for the MXU operands (e.g. jnp.bfloat16 on
        v6e/v7x for ~2-3x MXU throughput and half the weight DMA bytes).
        Accumulation is always float32.  Default: input dtype (float32 path).
    Returns (N, C, H, W) in x's dtype.
    """
    N, C, H, W = x_nchw.shape
    K = weight.shape[-1]
    pad = K // 2
    B = N * H
    P = B * W
    if compute_dtype is None:
        compute_dtype = x_nchw.dtype

    # Layout glue (one transpose in, one transpose out, no pad):
    #   NCHW -> (B, W, C) puts C_in on the 128-lane axis for the matmuls.
    x_bwc = jnp.transpose(x_nchw, (0, 2, 3, 1)).reshape(B, W, C)
    w_kcc = jnp.transpose(weight[:, :, 0, :], (2, 1, 0)).astype(compute_dtype)  # (K, Cin, Cout)
    b_2d = bias.reshape(1, C).astype(jnp.float32)

    out_cp = pl.pallas_call(
        _conv1d_same_kernel,
        out_shape=jax.ShapeDtypeStruct((C, P), x_nchw.dtype),
        grid_spec=pltpu.PrefetchScalarGridSpec(
            num_scalar_prefetch=0,
            grid=(1,),                       # whole problem in one step
            in_specs=[
                pl.BlockSpec((B, W, C), lambda i: (0, 0, 0)),
                pl.BlockSpec((K, C, C), lambda i: (0, 0, 0)),
                pl.BlockSpec((1, C), lambda i: (0, 0)),
            ],
            out_specs=pl.BlockSpec((C, P), lambda i: (0, 0)),
            scratch_shapes=[pltpu.VMEM((B, W + 2 * pad, C), x_nchw.dtype)],
        ),
        compiler_params=pltpu.CompilerParams(
            dimension_semantics=("arbitrary",),
        ),
    )(x_bwc, w_kcc, b_2d)

    # (C, B*W) -> (N, C, H, W): reshape + a single transpose.
    return jnp.transpose(out_cp.reshape(C, N, H, W), (1, 0, 2, 3))


def _reference(x_nchw, weight, bias):
    """Pure-JAX reference (exactly PyTorch Conv2d semantics, f32-precise)."""
    C = x_nchw.shape[1]
    pad = weight.shape[-1] // 2
    y = lax.conv_general_dilated(
        x_nchw.astype(jnp.float32), weight.astype(jnp.float32),
        window_strides=(1, 1), padding=((0, 0), (pad, pad)),
        dimension_numbers=("NCHW", "OIHW", "NCHW"),
        precision=lax.Precision.HIGHEST)
    return y + bias.reshape(1, C, 1, 1)


if __name__ == "__main__":
    num_hidden = 32          # C
    N, H, W = 2, 4, 16
    K = CONV_KERNEL_SIZE

    key = jax.random.PRNGKey(0)
    kx, kw, kb = jax.random.split(key, 3)

    x = jax.random.normal(kx, (N, num_hidden, H, W), dtype=jnp.float32)
    # Deterministic synthetic parameters (PyTorch Conv2d weight layout).
    bound = 1.0 / (num_hidden * K) ** 0.5
    weight = jax.random.uniform(
        kw, (num_hidden, num_hidden, 1, K),
        minval=-bound, maxval=bound, dtype=jnp.float32)
    bias = jax.random.uniform(
        kb, (num_hidden,), minval=-bound, maxval=bound, dtype=jnp.float32)

    ref = jax.block_until_ready(_reference(x, weight, bias))

    # float32 path: faithful to the PyTorch module.
    out = jax.block_until_ready(subsampling_layer_forward(x, weight, bias))
    assert out.shape == (N, num_hidden, H, W)
    assert jnp.allclose(out, ref, atol=1e-4, rtol=1e-4), "f32 mismatch vs reference"

    # bf16 MXU-input path (recommended on v6e/v7x): f32 accumulation,
    # looser tolerance because the matmul operands lose mantissa bits.
    out_bf16 = jax.block_until_ready(
        subsampling_layer_forward(x, weight, bias, compute_dtype=jnp.bfloat16))
    assert jnp.allclose(out_bf16, ref, atol=2e-2, rtol=2e-2), "bf16 mismatch vs reference"

    print("KERNEL_OK")
</pallas_src>

<mosaic_0001>
module attributes {stable_mosaic.version = 11 : i64} {
  func.func @_conv1d_same_kernel(%arg0: i32, %arg1: memref<8x16x32xf32, #tpu.memory_space<vmem>>, %arg2: memref<21x32x32xf32, #tpu.memory_space<vmem>>, %arg3: memref<1x32xf32, #tpu.memory_space<vmem>>, %arg4: memref<32x128xf32, #tpu.memory_space<vmem>>, %arg5: memref<8x36x32xf32, #tpu.memory_space<vmem>>) attributes {dimension_semantics = [#tpu.dimension_semantics<arbitrary>], iteration_bounds = array<i64: 1>, scalar_prefetch = 0 : i64, scratch_operands = 1 : i64, tpu.core_type = #tpu.core_type<tc>, window_params = [{pipeline_mode = #tpu.pipeline_mode<synchronous>, transform_indices = @transform_0, window_bounds = array<i64: 8, 16, 32>}, {pipeline_mode = #tpu.pipeline_mode<synchronous>, transform_indices = @transform_1, window_bounds = array<i64: 21, 32, 32>}, {pipeline_mode = #tpu.pipeline_mode<synchronous>, transform_indices = @transform_2, window_bounds = array<i64: 1, 32>}, {pipeline_mode = #tpu.pipeline_mode<synchronous>, transform_indices = @transform_3, window_bounds = array<i64: 32, 128>}]} {
    %cst = arith.constant 0.000000e+00 : f32
    %0 = vector.broadcast %cst : f32 to vector<8x36x32xf32>
    %c0 = arith.constant 0 : index
    %c0_0 = arith.constant 0 : index
    %c0_1 = arith.constant 0 : index
    %1 = vector.load %arg5[%c0, %c0_0, %c0_1] : memref<8x36x32xf32, #tpu.memory_space<vmem>>, vector<8x36x32xf32>
    tpu.vector_store %arg5[%c0, %c0_0, %c0_1], %0 {strides = array<i32>} : memref<8x36x32xf32, #tpu.memory_space<vmem>>, vector<8x36x32xf32>,
    %c0_2 = arith.constant 0 : index
    %c0_3 = arith.constant 0 : index
    %c0_4 = arith.constant 0 : index
    %2 = vector.load %arg1[%c0_2, %c0_3, %c0_4] : memref<8x16x32xf32, #tpu.memory_space<vmem>>, vector<8x16x32xf32>
    %c0_5 = arith.constant 0 : index
    %c10 = arith.constant 10 : index
    %c0_6 = arith.constant 0 : index
    %3 = vector.load %arg5[%c0_5, %c10, %c0_6] : memref<8x36x32xf32, #tpu.memory_space<vmem>>, vector<8x16x32xf32>
    tpu.vector_store %arg5[%c0_5, %c10, %c0_6], %2 {strides = array<i32>} : memref<8x36x32xf32, #tpu.memory_space<vmem>>, vector<8x16x32xf32>,
    %c0_7 = arith.constant 0 : index
    %c0_8 = arith.constant 0 : index
    %4 = vector.load %arg3[%c0_7, %c0_8] : memref<1x32xf32, #tpu.memory_space<vmem>>, vector<1x32xf32>
    %5 = vector.shape_cast %4 : vector<1x32xf32> to vector<1x32xf32>
    %6 = vector.broadcast %5 : vector<1x32xf32> to vector<128x32xf32>
    %c0_9 = arith.constant 0 : index
    %c0_10 = arith.constant 0 : index
    %c0_11 = arith.constant 0 : index
    %7 = vector.load %arg5[%c0_9, %c0_10, %c0_11] : memref<8x36x32xf32, #tpu.memory_space<vmem>>, vector<8x16x32xf32>
    %8 = vector.shape_cast %7 : vector<8x16x32xf32> to vector<128x32xf32>
    %c0_12 = arith.constant 0 : index
    %c0_13 = arith.constant 0 : index
    %c0_14 = arith.constant 0 : index
    %9 = vector.load %arg2[%c0_12, %c0_13, %c0_14] : memref<21x32x32xf32, #tpu.memory_space<vmem>>, vector<1x32x32xf32>
    %10 = vector.shape_cast %9 : vector<1x32x32xf32> to vector<32x32xf32>
    %cst_15 = arith.constant dense<0.000000e+00> : vector<128x32xf32>
    %11 = tpu.matmul %8, %10, %cst_15 {dimension_numbers = #tpu.dot_dimension_numbers<[1], [0], [0], [1], [0, 0, 1, 1], [], []>} : vector<128x32xf32>, vector<32x32xf32>, vector<128x32xf32> -> vector<128x32xf32>
    %12 = arith.addf %6, %11 : vector<128x32xf32>
    %c0_16 = arith.constant 0 : index
    %c1 = arith.constant 1 : index
    %c0_17 = arith.constant 0 : index
    %13 = vector.load %arg5[%c0_16, %c1, %c0_17] : memref<8x36x32xf32, #tpu.memory_space<vmem>>, vector<8x16x32xf32>
    %14 = vector.shape_cast %13 : vector<8x16x32xf32> to vector<128x32xf32>
    %c1_18 = arith.constant 1 : index
    %c0_19 = arith.constant 0 : index
    %c0_20 = arith.constant 0 : index
    %15 = vector.load %arg2[%c1_18, %c0_19, %c0_20] : memref<21x32x32xf32, #tpu.memory_space<vmem>>, vector<1x32x32xf32>
    %16 = vector.shape_cast %15 : vector<1x32x32xf32> to vector<32x32xf32>
    %cst_21 = arith.constant dense<0.000000e+00> : vector<128x32xf32>
    %17 = tpu.matmul %14, %16, %cst_21 {dimension_numbers = #tpu.dot_dimension_numbers<[1], [0], [0], [1], [0, 0, 1, 1], [], []>} : vector<128x32xf32>, vector<32x32xf32>, vector<128x32xf32> -> vector<128x32xf32>
    %18 = arith.addf %12, %17 : vector<128x32xf32>
    %c0_22 = arith.constant 0 : index
    %c2 = arith.constant 2 : index
    %c0_23 = arith.constant 0 : index
    %19 = vector.load %arg5[%c0_22, %c2, %c0_23] : memref<8x36x32xf32, #tpu.memory_space<vmem>>, vector<8x16x32xf32>
    %20 = vector.shape_cast %19 : vector<8x16x32xf32> to vector<128x32xf32>
    %c2_24 = arith.constant 2 : index
    %c0_25 = arith.constant 0 : index
    %c0_26 = arith.constant 0 : index
    %21 = vector.load %arg2[%c2_24, %c0_25, %c0_26] : memref<21x32x32xf32, #tpu.memory_space<vmem>>, vector<1x32x32xf32>
    %22 = vector.shape_cast %21 : vector<1x32x32xf32> to vector<32x32xf32>
    %cst_27 = arith.constant dense<0.000000e+00> : vector<128x32xf32>
    %23 = tpu.matmul %20, %22, %cst_27 {dimension_numbers = #tpu.dot_dimension_numbers<[1], [0], [0], [1], [0, 0, 1, 1], [], []>} : vector<128x32xf32>, vector<32x32xf32>, vector<128x32xf32> -> vector<128x32xf32>
    %24 = arith.addf %18, %23 : vector<128x32xf32>
    %c0_28 = arith.constant 0 : index
    %c3 = arith.constant 3 : index
    %c0_29 = arith.constant 0 : index
    %25 = vector.load %arg5[%c0_28, %c3, %c0_29] : memref<8x36x32xf32, #tpu.memory_space<vmem>>, vector<8x16x32xf32>
    %26 = vector.shape_cast %25 : vector<8x16x32xf32> to vector<128x32xf32>
    %c3_30 = arith.constant 3 : index
    %c0_31 = arith.constant 0 : index
    %c0_32 = arith.constant 0 : index
    %27 = vector.load %arg2[%c3_30, %c0_31, %c0_32] : memref<21x32x32xf32, #tpu.memory_space<vmem>>, vector<1x32x32xf32>
    %28 = vector.shape_cast %27 : vector<1x32x32xf32> to vector<32x32xf32>
    %cst_33 = arith.constant dense<0.000000e+00> : vector<128x32xf32>
    %29 = tpu.matmul %26, %28, %cst_33 {dimension_numbers = #tpu.dot_dimension_numbers<[1], [0], [0], [1], [0, 0, 1, 1], [], []>} : vector<128x32xf32>, vector<32x32xf32>, vector<128x32xf32> -> vector<128x32xf32>
    %30 = arith.addf %24, %29 : vector<128x32xf32>
    %c0_34 = arith.constant 0 : index
    %c4 = arith.constant 4 : index
    %c0_35 = arith.constant 0 : index
    %31 = vector.load %arg5[%c0_34, %c4, %c0_35] : memref<8x36x32xf32, #tpu.memory_space<vmem>>, vector<8x16x32xf32>
    %32 = vector.shape_cast %31 : vector<8x16x32xf32> to vector<128x32xf32>
    %c4_36 = arith.constant 4 : index
    %c0_37 = arith.constant 0 : index
    %c0_38 = arith.constant 0 : index
    %33 = vector.load %arg2[%c4_36, %c0_37, %c0_38] : memref<21x32x32xf32, #tpu.memory_space<vmem>>, vector<1x32x32xf32>
    %34 = vector.shape_cast %33 : vector<1x32x32xf32> to vector<32x32xf32>
    %cst_39 = arith.constant dense<0.000000e+00> : vector<128x32xf32>
    %35 = tpu.matmul %32, %34, %cst_39 {dimension_numbers = #tpu.dot_dimension_numbers<[1], [0], [0], [1], [0, 0, 1, 1], [], []>} : vector<128x32xf32>, vector<32x32xf32>, vector<128x32xf32> -> vector<128x32xf32>
    %36 = arith.addf %30, %35 : vector<128x32xf32>
    %c0_40 = arith.constant 0 : index
    %c5 = arith.constant 5 : index
    %c0_41 = arith.constant 0 : index
    %37 = vector.load %arg5[%c0_40, %c5, %c0_41] : memref<8x36x32xf32, #tpu.memory_space<vmem>>, vector<8x16x32xf32>
    %38 = vector.shape_cast %37 : vector<8x16x32xf32> to vector<128x32xf32>
    %c5_42 = arith.constant 5 : index
    %c0_43 = arith.constant 0 : index
    %c0_44 = arith.constant 0 : index
    %39 = vector.load %arg2[%c5_42, %c0_43, %c0_44] : memref<21x32x32xf32, #tpu.memory_space<vmem>>, vector<1x32x32xf32>
    %40 = vector.shape_cast %39 : vector<1x32x32xf32> to vector<32x32xf32>
    %cst_45 = arith.constant dense<0.000000e+00> : vector<128x32xf32>
    %41 = tpu.matmul %38, %40, %cst_45 {dimension_numbers = #tpu.dot_dimension_numbers<[1], [0], [0], [1], [0, 0, 1, 1], [], []>} : vector<128x32xf32>, vector<32x32xf32>, vector<128x32xf32> -> vector<128x32xf32>
    %42 = arith.addf %36, %41 : vector<128x32xf32>
    %c0_46 = arith.constant 0 : index
    %c6 = arith.constant 6 : index
    %c0_47 = arith.constant 0 : index
    %43 = vector.load %arg5[%c0_46, %c6, %c0_47] : memref<8x36x32xf32, #tpu.memory_space<vmem>>, vector<8x16x32xf32>
    %44 = vector.shape_cast %43 : vector<8x16x32xf32> to vector<128x32xf32>
    %c6_48 = arith.constant 6 : index
    %c0_49 = arith.constant 0 : index
    %c0_50 = arith.constant 0 : index
    %45 = vector.load %arg2[%c6_48, %c0_49, %c0_50] : memref<21x32x32xf32, #tpu.memory_space<vmem>>, vector<1x32x32xf32>
    %46 = vector.shape_cast %45 : vector<1x32x32xf32> to vector<32x32xf32>
    %cst_51 = arith.constant dense<0.000000e+00> : vector<128x32xf32>
    %47 = tpu.matmul %44, %46, %cst_51 {dimension_numbers = #tpu.dot_dimension_numbers<[1], [0], [0], [1], [0, 0, 1, 1], [], []>} : vector<128x32xf32>, vector<32x32xf32>, vector<128x32xf32> -> vector<128x32xf32>
    %48 = arith.addf %42, %47 : vector<128x32xf32>
    %c0_52 = arith.constant 0 : index
    %c7 = arith.constant 7 : index
    %c0_53 = arith.constant 0 : index
    %49 = vector.load %arg5[%c0_52, %c7, %c0_53] : memref<8x36x32xf32, #tpu.memory_space<vmem>>, vector<8x16x32xf32>
    %50 = vector.shape_cast %49 : vector<8x16x32xf32> to vector<128x32xf32>
    %c7_54 = arith.constant 7 : index
    %c0_55 = arith.constant 0 : index
    %c0_56 = arith.constant 0 : index
    %51 = vector.load %arg2[%c7_54, %c0_55, %c0_56] : memref<21x32x32xf32, #tpu.memory_space<vmem>>, vector<1x32x32xf32>
    %52 = vector.shape_cast %51 : vector<1x32x32xf32> to vector<32x32xf32>
    %cst_57 = arith.constant dense<0.000000e+00> : vector<128x32xf32>
    %53 = tpu.matmul %50, %52, %cst_57 {dimension_numbers = #tpu.dot_dimension_numbers<[1], [0], [0], [1], [0, 0, 1, 1], [], []>} : vector<128x32xf32>, vector<32x32xf32>, vector<128x32xf32> -> vector<128x32xf32>
    %54 = arith.addf %48, %53 : vector<128x32xf32>
    %c0_58 = arith.constant 0 : index
    %c8 = arith.constant 8 : index
    %c0_59 = arith.constant 0 : index
    %55 = vector.load %arg5[%c0_58, %c8, %c0_59] : memref<8x36x32xf32, #tpu.memory_space<vmem>>, vector<8x16x32xf32>
    %56 = vector.shape_cast %55 : vector<8x16x32xf32> to vector<128x32xf32>
    %c8_60 = arith.constant 8 : index
    %c0_61 = arith.constant 0 : index
    %c0_62 = arith.constant 0 : index
    %57 = vector.load %arg2[%c8_60, %c0_61, %c0_62] : memref<21x32x32xf32, #tpu.memory_space<vmem>>, vector<1x32x32xf32>
    %58 = vector.shape_cast %57 : vector<1x32x32xf32> to vector<32x32xf32>
    %cst_63 = arith.constant dense<0.000000e+00> : vector<128x32xf32>
    %59 = tpu.matmul %56, %58, %cst_63 {dimension_numbers = #tpu.dot_dimension_numbers<[1], [0], [0], [1], [0, 0, 1, 1], [], []>} : vector<128x32xf32>, vector<32x32xf32>, vector<128x32xf32> -> vector<128x32xf32>
    %60 = arith.addf %54, %59 : vector<128x32xf32>
    %c0_64 = arith.constant 0 : index
    %c9 = arith.constant 9 : index
    %c0_65 = arith.constant 0 : index
    %61 = vector.load %arg5[%c0_64, %c9, %c0_65] : memref<8x36x32xf32, #tpu.memory_space<vmem>>, vector<8x16x32xf32>
    %62 = vector.shape_cast %61 : vector<8x16x32xf32> to vector<128x32xf32>
    %c9_66 = arith.constant 9 : index
    %c0_67 = arith.constant 0 : index
    %c0_68 = arith.constant 0 : index
    %63 = vector.load %arg2[%c9_66, %c0_67, %c0_68] : memref<21x32x32xf32, #tpu.memory_space<vmem>>, vector<1x32x32xf32>
    %64 = vector.shape_cast %63 : vector<1x32x32xf32> to vector<32x32xf32>
    %cst_69 = arith.constant dense<0.000000e+00> : vector<128x32xf32>
    %65 = tpu.matmul %62, %64, %cst_69 {dimension_numbers = #tpu.dot_dimension_numbers<[1], [0], [0], [1], [0, 0, 1, 1], [], []>} : vector<128x32xf32>, vector<32x32xf32>, vector<128x32xf32> -> vector<128x32xf32>
    %66 = arith.addf %60, %65 : vector<128x32xf32>
    %c0_70 = arith.constant 0 : index
    %c10_71 = arith.constant 10 : index
    %c0_72 = arith.constant 0 : index
    %67 = vector.load %arg5[%c0_70, %c10_71, %c0_72] : memref<8x36x32xf32, #tpu.memory_space<vmem>>, vector<8x16x32xf32>
    %68 = vector.shape_cast %67 : vector<8x16x32xf32> to vector<128x32xf32>
    %c10_73 = arith.constant 10 : index
    %c0_74 = arith.constant 0 : index
    %c0_75 = arith.constant 0 : index
    %69 = vector.load %arg2[%c10_73, %c0_74, %c0_75] : memref<21x32x32xf32, #tpu.memory_space<vmem>>, vector<1x32x32xf32>
    %70 = vector.shape_cast %69 : vector<1x32x32xf32> to vector<32x32xf32>
    %cst_76 = arith.constant dense<0.000000e+00> : vector<128x32xf32>
    %71 = tpu.matmul %68, %70, %cst_76 {dimension_numbers = #tpu.dot_dimension_numbers<[1], [0], [0], [1], [0, 0, 1, 1], [], []>} : vector<128x32xf32>, vector<32x32xf32>, vector<128x32xf32> -> vector<128x32xf32>
    %72 = arith.addf %66, %71 : vector<128x32xf32>
    %c0_77 = arith.constant 0 : index
    %c11 = arith.constant 11 : index
    %c0_78 = arith.constant 0 : index
    %73 = vector.load %arg5[%c0_77, %c11, %c0_78] : memref<8x36x32xf32, #tpu.memory_space<vmem>>, vector<8x16x32xf32>
    %74 = vector.shape_cast %73 : vector<8x16x32xf32> to vector<128x32xf32>
    %c11_79 = arith.constant 11 : index
    %c0_80 = arith.constant 0 : index
    %c0_81 = arith.constant 0 : index
    %75 = vector.load %arg2[%c11_79, %c0_80, %c0_81] : memref<21x32x32xf32, #tpu.memory_space<vmem>>, vector<1x32x32xf32>
    %76 = vector.shape_cast %75 : vector<1x32x32xf32> to vector<32x32xf32>
    %cst_82 = arith.constant dense<0.000000e+00> : vector<128x32xf32>
    %77 = tpu.matmul %74, %76, %cst_82 {dimension_numbers = #tpu.dot_dimension_numbers<[1], [0], [0], [1], [0, 0, 1, 1], [], []>} : vector<128x32xf32>, vector<32x32xf32>, vector<128x32xf32> -> vector<128x32xf32>
    %78 = arith.addf %72, %77 : vector<128x32xf32>
    %c0_83 = arith.constant 0 : index
    %c12 = arith.constant 12 : index
    %c0_84 = arith.constant 0 : index
    %79 = vector.load %arg5[%c0_83, %c12, %c0_84] : memref<8x36x32xf32, #tpu.memory_space<vmem>>, vector<8x16x32xf32>
    %80 = vector.shape_cast %79 : vector<8x16x32xf32> to vector<128x32xf32>
    %c12_85 = arith.constant 12 : index
    %c0_86 = arith.constant 0 : index
    %c0_87 = arith.constant 0 : index
    %81 = vector.load %arg2[%c12_85, %c0_86, %c0_87] : memref<21x32x32xf32, #tpu.memory_space<vmem>>, vector<1x32x32xf32>
    %82 = vector.shape_cast %81 : vector<1x32x32xf32> to vector<32x32xf32>
    %cst_88 = arith.constant dense<0.000000e+00> : vector<128x32xf32>
    %83 = tpu.matmul %80, %82, %cst_88 {dimension_numbers = #tpu.dot_dimension_numbers<[1], [0], [0], [1], [0, 0, 1, 1], [], []>} : vector<128x32xf32>, vector<32x32xf32>, vector<128x32xf32> -> vector<128x32xf32>
    %84 = arith.addf %78, %83 : vector<128x32xf32>
    %c0_89 = arith.constant 0 : index
    %c13 = arith.constant 13 : index
    %c0_90 = arith.constant 0 : index
    %85 = vector.load %arg5[%c0_89, %c13, %c0_90] : memref<8x36x32xf32, #tpu.memory_space<vmem>>, vector<8x16x32xf32>
    %86 = vector.shape_cast %85 : vector<8x16x32xf32> to vector<128x32xf32>
    %c13_91 = arith.constant 13 : index
    %c0_92 = arith.constant 0 : index
    %c0_93 = arith.constant 0 : index
    %87 = vector.load %arg2[%c13_91, %c0_92, %c0_93] : memref<21x32x32xf32, #tpu.memory_space<vmem>>, vector<1x32x32xf32>
    %88 = vector.shape_cast %87 : vector<1x32x32xf32> to vector<32x32xf32>
    %cst_94 = arith.constant dense<0.000000e+00> : vector<128x32xf32>
    %89 = tpu.matmul %86, %88, %cst_94 {dimension_numbers = #tpu.dot_dimension_numbers<[1], [0], [0], [1], [0, 0, 1, 1], [], []>} : vector<128x32xf32>, vector<32x32xf32>, vector<128x32xf32> -> vector<128x32xf32>
    %90 = arith.addf %84, %89 : vector<128x32xf32>
    %c0_95 = arith.constant 0 : index
    %c14 = arith.constant 14 : index
    %c0_96 = arith.constant 0 : index
    %91 = vector.load %arg5[%c0_95, %c14, %c0_96] : memref<8x36x32xf32, #tpu.memory_space<vmem>>, vector<8x16x32xf32>
    %92 = vector.shape_cast %91 : vector<8x16x32xf32> to vector<128x32xf32>
    %c14_97 = arith.constant 14 : index
    %c0_98 = arith.constant 0 : index
    %c0_99 = arith.constant 0 : index
    %93 = vector.load %arg2[%c14_97, %c0_98, %c0_99] : memref<21x32x32xf32, #tpu.memory_space<vmem>>, vector<1x32x32xf32>
    %94 = vector.shape_cast %93 : vector<1x32x32xf32> to vector<32x32xf32>
    %cst_100 = arith.constant dense<0.000000e+00> : vector<128x32xf32>
    %95 = tpu.matmul %92, %94, %cst_100 {dimension_numbers = #tpu.dot_dimension_numbers<[1], [0], [0], [1], [0, 0, 1, 1], [], []>} : vector<128x32xf32>, vector<32x32xf32>, vector<128x32xf32> -> vector<128x32xf32>
    %96 = arith.addf %90, %95 : vector<128x32xf32>
    %c0_101 = arith.constant 0 : index
    %c15 = arith.constant 15 : index
    %c0_102 = arith.constant 0 : index
    %97 = vector.load %arg5[%c0_101, %c15, %c0_102] : memref<8x36x32xf32, #tpu.memory_space<vmem>>, vector<8x16x32xf32>
    %98 = vector.shape_cast %97 : vector<8x16x32xf32> to vector<128x32xf32>
    %c15_103 = arith.constant 15 : index
    %c0_104 = arith.constant 0 : index
    %c0_105 = arith.constant 0 : index
    %99 = vector.load %arg2[%c15_103, %c0_104, %c0_105] : memref<21x32x32xf32, #tpu.memory_space<vmem>>, vector<1x32x32xf32>
    %100 = vector.shape_cast %99 : vector<1x32x32xf32> to vector<32x32xf32>
    %cst_106 = arith.constant dense<0.000000e+00> : vector<128x32xf32>
    %101 = tpu.matmul %98, %100, %cst_106 {dimension_numbers = #tpu.dot_dimension_numbers<[1], [0], [0], [1], [0, 0, 1, 1], [], []>} : vector<128x32xf32>, vector<32x32xf32>, vector<128x32xf32> -> vector<128x32xf32>
    %102 = arith.addf %96, %101 : vector<128x32xf32>
    %c0_107 = arith.constant 0 : index
    %c16 = arith.constant 16 : index
    %c0_108 = arith.constant 0 : index
    %103 = vector.load %arg5[%c0_107, %c16, %c0_108] : memref<8x36x32xf32, #tpu.memory_space<vmem>>, vector<8x16x32xf32>
    %104 = vector.shape_cast %103 : vector<8x16x32xf32> to vector<128x32xf32>
    %c16_109 = arith.constant 16 : index
    %c0_110 = arith.constant 0 : index
    %c0_111 = arith.constant 0 : index
    %105 = vector.load %arg2[%c16_109, %c0_110, %c0_111] : memref<21x32x32xf32, #tpu.memory_space<vmem>>, vector<1x32x32xf32>
    %106 = vector.shape_cast %105 : vector<1x32x32xf32> to vector<32x32xf32>
    %cst_112 = arith.constant dense<0.000000e+00> : vector<128x32xf32>
    %107 = tpu.matmul %104, %106, %cst_112 {dimension_numbers = #tpu.dot_dimension_numbers<[1], [0], [0], [1], [0, 0, 1, 1], [], []>} : vector<128x32xf32>, vector<32x32xf32>, vector<128x32xf32> -> vector<128x32xf32>
    %108 = arith.addf %102, %107 : vector<128x32xf32>
    %c0_113 = arith.constant 0 : index
    %c17 = arith.constant 17 : index
    %c0_114 = arith.constant 0 : index
    %109 = vector.load %arg5[%c0_113, %c17, %c0_114] : memref<8x36x32xf32, #tpu.memory_space<vmem>>, vector<8x16x32xf32>
    %110 = vector.shape_cast %109 : vector<8x16x32xf32> to vector<128x32xf32>
    %c17_115 = arith.constant 17 : index
    %c0_116 = arith.constant 0 : index
    %c0_117 = arith.constant 0 : index
    %111 = vector.load %arg2[%c17_115, %c0_116, %c0_117] : memref<21x32x32xf32, #tpu.memory_space<vmem>>, vector<1x32x32xf32>
    %112 = vector.shape_cast %111 : vector<1x32x32xf32> to vector<32x32xf32>
    %cst_118 = arith.constant dense<0.000000e+00> : vector<128x32xf32>
    %113 = tpu.matmul %110, %112, %cst_118 {dimension_numbers = #tpu.dot_dimension_numbers<[1], [0], [0], [1], [0, 0, 1, 1], [], []>} : vector<128x32xf32>, vector<32x32xf32>, vector<128x32xf32> -> vector<128x32xf32>
    %114 = arith.addf %108, %113 : vector<128x32xf32>
    %c0_119 = arith.constant 0 : index
    %c18 = arith.constant 18 : index
    %c0_120 = arith.constant 0 : index
    %115 = vector.load %arg5[%c0_119, %c18, %c0_120] : memref<8x36x32xf32, #tpu.memory_space<vmem>>, vector<8x16x32xf32>
    %116 = vector.shape_cast %115 : vector<8x16x32xf32> to vector<128x32xf32>
    %c18_121 = arith.constant 18 : index
    %c0_122 = arith.constant 0 : index
    %c0_123 = arith.constant 0 : index
    %117 = vector.load %arg2[%c18_121, %c0_122, %c0_123] : memref<21x32x32xf32, #tpu.memory_space<vmem>>, vector<1x32x32xf32>
    %118 = vector.shape_cast %117 : vector<1x32x32xf32> to vector<32x32xf32>
    %cst_124 = arith.constant dense<0.000000e+00> : vector<128x32xf32>
    %119 = tpu.matmul %116, %118, %cst_124 {dimension_numbers = #tpu.dot_dimension_numbers<[1], [0], [0], [1], [0, 0, 1, 1], [], []>} : vector<128x32xf32>, vector<32x32xf32>, vector<128x32xf32> -> vector<128x32xf32>
    %120 = arith.addf %114, %119 : vector<128x32xf32>
    %c0_125 = arith.constant 0 : index
    %c19 = arith.constant 19 : index
    %c0_126 = arith.constant 0 : index
    %121 = vector.load %arg5[%c0_125, %c19, %c0_126] : memref<8x36x32xf32, #tpu.memory_space<vmem>>, vector<8x16x32xf32>
    %122 = vector.shape_cast %121 : vector<8x16x32xf32> to vector<128x32xf32>
    %c19_127 = arith.constant 19 : index
    %c0_128 = arith.constant 0 : index
    %c0_129 = arith.constant 0 : index
    %123 = vector.load %arg2[%c19_127, %c0_128, %c0_129] : memref<21x32x32xf32, #tpu.memory_space<vmem>>, vector<1x32x32xf32>
    %124 = vector.shape_cast %123 : vector<1x32x32xf32> to vector<32x32xf32>
    %cst_130 = arith.constant dense<0.000000e+00> : vector<128x32xf32>
    %125 = tpu.matmul %122, %124, %cst_130 {dimension_numbers = #tpu.dot_dimension_numbers<[1], [0], [0], [1], [0, 0, 1, 1], [], []>} : vector<128x32xf32>, vector<32x32xf32>, vector<128x32xf32> -> vector<128x32xf32>
    %126 = arith.addf %120, %125 : vector<128x32xf32>
    %c0_131 = arith.constant 0 : index
    %c20 = arith.constant 20 : index
    %c0_132 = arith.constant 0 : index
    %127 = vector.load %arg5[%c0_131, %c20, %c0_132] : memref<8x36x32xf32, #tpu.memory_space<vmem>>, vector<8x16x32xf32>
    %128 = vector.shape_cast %127 : vector<8x16x32xf32> to vector<128x32xf32>
    %c20_133 = arith.constant 20 : index
    %c0_134 = arith.constant 0 : index
    %c0_135 = arith.constant 0 : index
    %129 = vector.load %arg2[%c20_133, %c0_134, %c0_135] : memref<21x32x32xf32, #tpu.memory_space<vmem>>, vector<1x32x32xf32>
    %130 = vector.shape_cast %129 : vector<1x32x32xf32> to vector<32x32xf32>
    %cst_136 = arith.constant dense<0.000000e+00> : vector<128x32xf32>
    %131 = tpu.matmul %128, %130, %cst_136 {dimension_numbers = #tpu.dot_dimension_numbers<[1], [0], [0], [1], [0, 0, 1, 1], [], []>} : vector<128x32xf32>, vector<32x32xf32>, vector<128x32xf32> -> vector<128x32xf32>
    %132 = arith.addf %126, %131 : vector<128x32xf32>
    %133 = tpu.transpose %132, [1, 0] : vector<128x32xf32> -> vector<32x128xf32>
    %c0_137 = arith.constant 0 : index
    %c0_138 = arith.constant 0 : index
    %134 = vector.load %arg4[%c0_137, %c0_138] : memref<32x128xf32, #tpu.memory_space<vmem>>, vector<32x128xf32>
    tpu.vector_store %arg4[%c0_137, %c0_138], %133 {strides = array<i32>} : memref<32x128xf32, #tpu.memory_space<vmem>>, vector<32x128xf32>,
    return
  }
  func.func @transform_0(%arg0: i32) -> (i32, i32, i32) {
    %c0_i32 = arith.constant 0 : i32
    %c0_i32_0 = arith.constant 0 : i32
    %c0_i32_1 = arith.constant 0 : i32
    %c0_i32_2 = arith.constant 0 : i32
    return %c0_i32, %c0_i32_0, %c0_i32_1 : i32, i32, i32
  }
  func.func @transform_1(%arg0: i32) -> (i32, i32, i32) {
    %c0_i32 = arith.constant 0 : i32
    %c0_i32_0 = arith.constant 0 : i32
    %c0_i32_1 = arith.constant 0 : i32
    %c0_i32_2 = arith.constant 0 : i32
    return %c0_i32, %c0_i32_0, %c0_i32_1 : i32, i32, i32
  }
  func.func @transform_2(%arg0: i32) -> (i32, i32) {
    %c0_i32 = arith.constant 0 : i32
    %c0_i32_0 = arith.constant 0 : i32
    %c0_i32_1 = arith.constant 0 : i32
    return %c0_i32, %c0_i32_0 : i32, i32
  }
  func.func @transform_3(%arg0: i32) -> (i32, i32) {
    %c0_i32 = arith.constant 0 : i32
    %c0_i32_0 = arith.constant 0 : i32
    %c0_i32_1 = arith.constant 0 : i32
    return %c0_i32, %c0_i32_0 : i32, i32
  }
}

</mosaic_0001>

<bundles_post_ra>
// kernel: tpu_custom_call.1
= control target key start
LH: loop header
LB: loop body
LE: loop exit
PB: predicated region body
PF: predicated region fallthrough
CT: control target
= control target key end

     0   :  { %8 = vsyncpa [#allocation4], 0  ;;  %s7848_s0 = inlined_call_operand.hbm [shape: f32[8,16,32], index: 0, kind: input, shape index: {}]   ;;  %s7849_s1 = inlined_call_operand.hbm [shape: f32[21,32,32], index: 1, kind: input, shape index: {}]   ;;  %s7850_s2 = inlined_call_operand.vmem [shape: f32[1,32], index: 2, kind: input, shape index: {}]   ;;  %s7851_s3 = inlined_call_operand.hbm [shape: f32[32,128], index: 3, kind: output, shape index: {}]  }
   0x1   :  { %9 = vsyncpa [#allocation7], 0 }
   0x2   :  { %10 = vsyncpa [#allocation5], 0  ;;  %s7022_s12 = smov [#allocation3]   ;;  %s6950_s16 = scalar_lea.hbm %s7848_s0, 2048 }
   0x3   :  { %s16_s13 = sshll.u32 %s7022_s12, 4  ;;  %p6951_p0 = scmp.ne.s32.totalorder %s7848_s0, %s6950_s16  ;;  %s17_s13 = int_to_ptr.vmem [resolvable:$true] %s16_s13 }
   0x4   :  { %p6954_p1 = scmp.lt.u32.totalorder %s6950_s16, %s7848_s0 }
   0x6   :  { %p6956_p2 = pnand %p6954_p1, %p6951_p0 }
   0x8   :  { %6959 = shalt.err (!%p6956_p2)
}
   0x9   :  { %s6960_s21 = scalar_lea.vmem %s17_s13, 2048  ;;  %p6965_p4 = scmp.lt.s32.totalorder %s17_s13, %s17_s13 }
   0xa   :  { %p6961_p3 = scmp.ne.s32.totalorder %s17_s13, %s6960_s21  ;;  %p6966_p5 = scmp.lt.s32.totalorder %s6960_s21, %s6960_s21 }
   0xc   :  { %p6967_p6 = por %p6966_p5, %p6965_p4 }
   0xe   :  { %p6968_p7 = pnand %p6967_p6, %p6961_p3 }
  0x10   :  { %6971 = shalt.err (!%p6968_p7)
}
  0x11   :  { %s7023_s22 = smov 128   ;;  %s7024_s23 = smov 8  }
  0x12   :  { %22 = dma.hbm_to_vmem [thread:$0]  %s7848_s0, 2048, %s17_s13, [#allocation4], %s7023_s22, %s7023_s22, %s7024_s23  }
  0x13   :  { %s7025_s26 = smov [#allocation6]   ;;  %s6972_s30 = scalar_lea.hbm %s7849_s1, 10752 }
  0x14   :  { %s28_s27 = sshll.u32 %s7025_s26, 4  ;;  %p6973_p8 = scmp.ne.s32.totalorder %s7849_s1, %s6972_s30  ;;  %s29_s27 = int_to_ptr.vmem [resolvable:$true] %s28_s27 }
  0x15   :  { %p6976_p9 = scmp.lt.u32.totalorder %s6972_s30, %s7849_s1 }
  0x17   :  { %p6978_p10 = pnand %p6976_p9, %p6973_p8 }
  0x19   :  { %6981 = shalt.err (!%p6978_p10)
}
  0x1a   :  { %s6982_s8 = scalar_lea.vmem %s29_s27, 10752  ;;  %p6987_p12 = scmp.lt.s32.totalorder %s29_s27, %s29_s27 }
  0x1b   :  { %p6983_p11 = scmp.ne.s32.totalorder %s29_s27, %s6982_s8  ;;  %p6988_p13 = scmp.lt.s32.totalorder %s6982_s8, %s6982_s8 }
  0x1d   :  { %p6989_p0 = por %p6988_p13, %p6987_p12 }
  0x1f   :  { %p6990_p1 = pnand %p6989_p0, %p6983_p11 }
  0x21   :  { %6993 = shalt.err (!%p6990_p1)
}
  0x22   :  { %34 = dma.hbm_to_vmem [thread:$0]  %s7849_s1, 10752, %s29_s27, [#allocation7], %s7023_s22, %s7023_s22, %s7024_s23  }
  0x23   :  { %7016 = dma.done.wait [#allocation4], 2048  }
  0x24   :  { %7017 = vsyncadd [#allocation4], 4294965248 }
  0x25   :  { %7018 = dma.done.wait [#allocation7], 10752  }
  0x26   :  { %7019 = vsyncadd [#allocation7], 4294956544  ;;  %vm43_vm0 = vcmask 261120   ;;  %v7026_v0 = vmov 0.0   ;;  %v140_v1 = vld [vmem:[#allocation6] sm:$0xff]  ;;  %v141_v2 = vld [vmem:[#allocation6 + $0x8] sm:$0xff] }
  0x27   :  { %44 = vst.msk [vmem:[#allocation2] sm:$0xff] %vm43_vm0, %v7026_v0  ;;  %45 = vst.msk [vmem:[#allocation2 + $0x8] sm:$0xff] %vm43_vm0, %v7026_v0  ;;  %v2440_v3 = vld [vmem:[#allocation6 + $0x140] sm:$0xff]  ;;  %v6436_v4 = vpack.c.bf16 %v141_v2, %v140_v1  ;;  %v2441_v5 = vld [vmem:[#allocation6 + $0x148] sm:$0xff]  ;;  %vm48_vm1 = vcmask 257024  }
  0x28   :  { %46 = vst.msk [vmem:[#allocation2 + $0x10] sm:$0xff] %vm43_vm0, %v7026_v0  ;;  %47 = vst.msk [vmem:[#allocation2 + $0x18] sm:$0xff] %vm43_vm0, %v7026_v0  ;;  %v142_v6 = vld [vmem:[#allocation6 + $0x10] sm:$0xff]  ;;  %v143_v7 = vld [vmem:[#allocation6 + $0x18] sm:$0xff]  ;;  %v7142_v8 = vpack.c.bf16 %v2441_v5, %v2440_v3 }
  0x29   :  { %50 = vst.msk [vmem:[#allocation2 + $0x28] sm:$0xff] %vm43_vm0, %v7026_v0  ;;  %51 = vst.msk [vmem:[#allocation2 + $0x30] sm:$0xff] %vm43_vm0, %v7026_v0  ;;  %v6440_v9 = vpack.c.bf16 %v143_v7, %v142_v6  ;;  %v2442_v10 = vld [vmem:[#allocation6 + $0x150] sm:$0xff]  ;;  %v2443_v11 = vld [vmem:[#allocation6 + $0x158] sm:$0xff]  ;;  %6437 = vmatprep.subr.bf16.mxu1 %v6436_v4 }
  0x2a   :  { %52 = vst.msk [vmem:[#allocation2 + $0x38] sm:$0xff] %vm43_vm0, %v7026_v0  ;;  %53 = vst.msk [vmem:[#allocation2 + $0x40] sm:$0xff] %vm43_vm0, %v7026_v0  ;;  %v7144_v13 = vpack.c.bf16 %v2443_v11, %v2442_v10  ;;  %v85_v14 = vld [vmem:[#allocation3] sm:$0xff]  ;;  %v86_v15 = vld [vmem:[#allocation3 + $0x8] sm:$0xff]  ;;  %6517 = vmatprep.subr.bf16.mxu0 %v7142_v8  ;;  %6439 = vmatpush3.bf16.msra.mxu1 %v6436_v4 }
  0x2b   :  { %55 = vst.msk [vmem:[#allocation2 + $0x50] sm:$0xff] %vm43_vm0, %v7026_v0  ;;  %56 = vst.msk [vmem:[#allocation2 + $0x58] sm:$0xff] %vm43_vm0, %v7026_v0  ;;  %v2670_v16 = vld [vmem:[#allocation6 + $0x160] sm:$0xff]  ;;  %v2671_v17 = vld [vmem:[#allocation6 + $0x168] sm:$0xff]  ;;  %6519 = vmatpush3.bf16.msra.mxu0 %v7142_v8  ;;  %6441 = vmatprep.subr.bf16.mxu1 %v6440_v9 }
  0x2c   :  { %57 = vst.msk [vmem:[#allocation2 + $0x60] sm:$0xff] %vm43_vm0, %v7026_v0  ;;  %58 = vst.msk [vmem:[#allocation2 + $0x68] sm:$0xff] %vm43_vm0, %v7026_v0  ;;  %v87_v18 = vld [vmem:[#allocation3 + $0x10] sm:$0xff]  ;;  %v88_v19 = vld [vmem:[#allocation3 + $0x18] sm:$0xff]  ;;  %6521 = vmatprep.subr.bf16.mxu0 %v7144_v13  ;;  %v6524_v21 = vpack.c.bf16 %v2671_v17, %v2670_v16 }
  0x2d   :  { %60 = vst.msk [vmem:[#allocation2 + $0x78] sm:$0xff] %vm43_vm0, %v7026_v0  ;;  %61 = vst.msk [vmem:[#allocation2 + $0x80] sm:$0xff] %vm43_vm0, %v7026_v0  ;;  %v89_v20 = vld [vmem:[#allocation3 + $0x20] sm:$0xff]  ;;  %v90_v22 = vld [vmem:[#allocation3 + $0x28] sm:$0xff] }
  0x2e   :  { %62 = vst.msk [vmem:[#allocation2 + $0x88] sm:$0xff] %vm43_vm0, %v7026_v0  ;;  %63 = vst.msk [vmem:[#allocation2 + $0x90] sm:$0xff] %vm43_vm0, %v7026_v0  ;;  %v124_v12 = vld [vmem:[#allocation2] sm:$0xff]  ;;  %v2672_v23 = vld [vmem:[#allocation6 + $0x170] sm:$0xff]  ;;  %6443 = vmatpush3.bf16.msra.mxu1 %v6440_v9 }
  0x2f   :  { %65 = vst.msk [vmem:[#allocation2 + $0xa0] sm:$0xff] %vm43_vm0, %v7026_v0  ;;  %66 = vst.msk [vmem:[#allocation2 + $0xa8] sm:$0xff] %vm43_vm0, %v7026_v0  ;;  %5772 = vmatprep.mubr.msk.f32.mxu1 %vm43_vm0, %v124_v12  ;;  %v91_v24 = vld [vmem:[#allocation3 + $0x30] sm:$0xff]  ;;  %v92_v25 = vld [vmem:[#allocation3 + $0x38] sm:$0xff]  ;;  %6523 = vmatpush3.bf16.msra.mxu0 %v7144_v13 }
  0x30   :  { %67 = vst.msk [vmem:[#allocation2 + $0xb0] sm:$0xff] %vm43_vm0, %v7026_v0  ;;  %68 = vst.msk [vmem:[#allocation2 + $0xb8] sm:$0xff] %vm43_vm0, %v7026_v0  ;;  %v2673_v26 = vld [vmem:[#allocation6 + $0x178] sm:$0xff]  ;;  %v370_v27 = vld [vmem:[#allocation6 + $0x20] sm:$0xff]  ;;  %6525 = vmatprep.subr.bf16.mxu0 %v6524_v21 }
  0x31   :  { %70 = vst.msk [vmem:[#allocation2 + $0xc8] sm:$0xff] %vm43_vm0, %v7026_v0  ;;  %71 = vst.msk [vmem:[#allocation2 + $0xd0] sm:$0xff] %vm43_vm0, %v7026_v0  ;;  %v371_v28 = vld [vmem:[#allocation6 + $0x28] sm:$0xff]  ;;  %v93_v30 = vld [vmem:[#allocation3 + $0x40] sm:$0xff]  ;;  %v6528_v36 = vpack.c.bf16 %v2673_v26, %v2672_v23 }
  0x32   :  { %72 = vst.msk [vmem:[#allocation2 + $0xd8] sm:$0xff] %vm43_vm0, %v7026_v0  ;;  %73 = vst.msk [vmem:[#allocation2 + $0xe0] sm:$0xff] %vm43_vm0, %v7026_v0  ;;  %v6444_v29 = vpack.c.bf16 %v371_v28, %v370_v27  ;;  %v126_v31 = vld [vmem:[#allocation2 + $0x28] sm:$0xff]  ;;  %v95_v32 = vld [vmem:[#allocation3 + $0x50] sm:$0xff] }
  0x33   :  { %75 = vst.msk [vmem:[#allocation2 + $0xf0] sm:$0xff] %vm43_vm0, %v7026_v0  ;;  %76 = vst.msk [vmem:[#allocation2 + $0xf8] sm:$0xff] %vm43_vm0, %v7026_v0  ;;  %v2900_v38 = vld [vmem:[#allocation6 + $0x180] sm:$0xff]  ;;  %v2901_v39 = vld [vmem:[#allocation6 + $0x188] sm:$0xff] }
  0x34   :  { %77 = vst.msk [vmem:[#allocation2 + $0x100] sm:$0xff] %vm43_vm0, %v7026_v0  ;;  %78 = vst.msk [vmem:[#allocation2 + $0x108] sm:$0xff] %vm43_vm0, %v7026_v0  ;;  %6445 = vmatprep.subr.bf16.mxu1 %v6444_v29  ;;  %v128_v42 = vld [vmem:[#allocation2 + $0x50] sm:$0xff]  ;;  %v6532_v44 = vpack.c.bf16 %v2901_v39, %v2900_v38  ;;  %v97_v45 = vld [vmem:[#allocation3 + $0x60] sm:$0xff] }
  0x35   :  { %80 = vst.msk [vmem:[#allocation2 + $0x118] sm:$0xff] %vm43_vm0, %v7026_v0  ;;  %81 = vst.msk [vmem:[#allocation2 + $0x120] sm:$0xff] %vm43_vm0, %v7026_v0  ;;  %v130_v48 = vld [vmem:[#allocation2 + $0x78] sm:$0xff]  ;;  %v99_v49 = vld [vmem:[#allocation3 + $0x70] sm:$0xff] }
  0x36   :  { %82 = vst.msk [vmem:[#allocation2 + $0x128] sm:$0xff] %vm43_vm0, %v7026_v0  ;;  %83 = vst.msk [vmem:[#allocation2 + $0x130] sm:$0xff] %vm43_vm0, %v7026_v0  ;;  %v372_v51 = vld [vmem:[#allocation6 + $0x30] sm:$0xff]  ;;  %v373_v52 = vld [vmem:[#allocation6 + $0x38] sm:$0xff] }
  0x37   :  { %101 = vst.msk [vmem:[#allocation2 + $0xa] sm:$0xff] %vm43_vm0, %v85_v14  ;;  %102 = vst.msk [vmem:[#allocation2 + $0x12] sm:$0xff] %vm43_vm0, %v86_v15  ;;  %v6448_v53 = vpack.c.bf16 %v373_v52, %v372_v51  ;;  %v94_v54 = vld [vmem:[#allocation3 + $0x48] sm:$0xff]  ;;  %v132_v57 = vld [vmem:[#allocation2 + $0xa0] sm:$0xff] }
  0x38   :  { %103 = vst.msk [vmem:[#allocation2 + $0x32] sm:$0xff] %vm43_vm0, %v87_v18  ;;  %104 = vst.msk [vmem:[#allocation2 + $0x3a] sm:$0xff] %vm43_vm0, %v88_v19  ;;  %v96_v58 = vld [vmem:[#allocation3 + $0x58] sm:$0xff]  ;;  %v98_v60 = vld [vmem:[#allocation3 + $0x68] sm:$0xff] }
  0x39   :  { %105 = vst.msk [vmem:[#allocation2 + $0x5a] sm:$0xff] %vm43_vm0, %v89_v20  ;;  %106 = vst.msk [vmem:[#allocation2 + $0x62] sm:$0xff] %vm43_vm0, %v90_v22  ;;  %v2902_v61 = vld [vmem:[#allocation6 + $0x190] sm:$0xff]  ;;  %v2903_v62 = vld [vmem:[#allocation6 + $0x198] sm:$0xff] }
  0x3a   :  { %107 = vst.msk [vmem:[#allocation2 + $0x82] sm:$0xff] %vm43_vm0, %v91_v24  ;;  %108 = vst.msk [vmem:[#allocation2 + $0x8a] sm:$0xff] %vm43_vm0, %v92_v25  ;;  %v100_v63 = vld [vmem:[#allocation3 + $0x78] sm:$0xff]  ;;  %v600_v2 = vld [vmem:[#allocation6 + $0x40] sm:$0xff]  ;;  %v6536_v9 = vpack.c.bf16 %v2903_v62, %v2902_v61 }
  0x3b   :  { %109 = vst.msk [vmem:[#allocation2 + $0xaa] sm:$0xff] %vm43_vm0, %v93_v30  ;;  %111 = vst.msk [vmem:[#allocation2 + $0xd2] sm:$0xff] %vm43_vm0, %v95_v32  ;;  %v601_v3 = vld [vmem:[#allocation6 + $0x48] sm:$0xff]  ;;  %v3130_v10 = vld [vmem:[#allocation6 + $0x1a0] sm:$0xff] }
  0x3c   :  { %113 = vst.msk [vmem:[#allocation2 + $0xfa] sm:$0xff] %vm43_vm0, %v97_v45  ;;  %115 = vst.msk [vmem:[#allocation2 + $0x122] sm:$0xff] %vm43_vm0, %v99_v49  ;;  %v134_v5 = vld [vmem:[#allocation2 + $0xc8] sm:$0xff]  ;;  %v6452_v6 = vpack.c.bf16 %v601_v3, %v600_v2  ;;  %v136_v15 = vld [vmem:[#allocation2 + $0xf0] sm:$0xff] }
  0x3d   :  { %110 = vst.msk [vmem:[#allocation2 + $0xb2] sm:$0xff] %vm43_vm0, %v94_v54  ;;  %112 = vst.msk [vmem:[#allocation2 + $0xda] sm:$0xff] %vm43_vm0, %v96_v58  ;;  %v3131_v11 = vld [vmem:[#allocation6 + $0x1a8] sm:$0xff]  ;;  %v138_v20 = vld [vmem:[#allocation2 + $0x118] sm:$0xff] }
  0x3e   :  { %v7160_v33 = vld [vmem:[#allocation2 + $0xa] sm:$0xff]  ;;  %v2424_v35 = vld [vmem:[#allocation2 + $0x12] sm:$0xff]  ;;  %114 = vst.msk [vmem:[#allocation2 + $0x102] sm:$0xff] %vm43_vm0, %v98_v60  ;;  %116 = vst.msk [vmem:[#allocation2 + $0x12a] sm:$0xff] %vm43_vm0, %v100_v63  ;;  %v7208_v17 = vpack.c.bf16 %v3131_v11, %v3130_v10 }
  0x3f   :  { %v125_v34 = vld [vmem:[#allocation2 + $0x8] sm:$0xff]  ;;  %6092 = vmatprep.mubr.msk.f32.mxu0 %vm43_vm0, %v7160_v33  ;;  %v7166_v37 = vld [vmem:[#allocation2 + $0x32] sm:$0xff]  ;;  %v2426_v41 = vld [vmem:[#allocation2 + $0x3a] sm:$0xff]  ;;  %49 = vst.msk [vmem:[#allocation2 + $0x20] sm:$0xf] %vm48_vm1, %v7026_v0 }
  0x40   :  { %5773 = vmatmul.mubr.msk.f32.vlgmr.msra.gmra.mrb[0].mxu1 %vm43_vm0, %v125_v34  ;;  %6093 = vmatmul.mubr.msk.f32.vlgmr.msra.gmra.mrb[0].mxu0 %vm43_vm0, %v2424_v35  ;;  %v127_v40 = vld [vmem:[#allocation2 + $0x30] sm:$0xff]  ;;  %v7172_v43 = vld [vmem:[#allocation2 + $0x5a] sm:$0xff]  ;;  %v2428_v47 = vld [vmem:[#allocation2 + $0x62] sm:$0xff]  ;;  %54 = vst.msk [vmem:[#allocation2 + $0x48] sm:$0xf] %vm48_vm1, %v7026_v0 }
  0x41   :  { %5775 = vmatprep.mubr.msk.f32.mxu1 %vm43_vm0, %v126_v31  ;;  %6527 = vmatpush3.bf16.msra.mxu0 %v6524_v21  ;;  %v129_v46 = vld [vmem:[#allocation2 + $0x58] sm:$0xff]  ;;  %v7180_v50 = vld [vmem:[#allocation2 + $0x82] sm:$0xff]  ;;  %v2430_v56 = vld [vmem:[#allocation2 + $0x8a] sm:$0xff]  ;;  %59 = vst.msk [vmem:[#allocation2 + $0x70] sm:$0xf] %vm48_vm1, %v7026_v0 }
  0x42   :  { %6095 = vmatprep.mubr.msk.f32.mxu0 %vm43_vm0, %v7166_v37  ;;  %6529 = vmatprep.subr.bf16.mxu0 %v6528_v36  ;;  %v131_v55 = vld [vmem:[#allocation2 + $0x80] sm:$0xff]  ;;  %v7189_v59 = vld [vmem:[#allocation2 + $0xb] sm:$0xff]  ;;  %v2654_v4 = vld [vmem:[#allocation2 + $0x13] sm:$0xff]  ;;  %64 = vst.msk [vmem:[#allocation2 + $0x98] sm:$0xf] %vm48_vm1, %v7026_v0 }
  0x43   :  { %6447 = vmatpush3.bf16.msra.mxu1 %v6444_v29  ;;  %v133_v1 = vld [vmem:[#allocation2 + $0xa8] sm:$0xff]  ;;  %v7199_v7 = vld [vmem:[#allocation2 + $0x33] sm:$0xff]  ;;  %v2656_v14 = vld [vmem:[#allocation2 + $0x3b] sm:$0xff]  ;;  %69 = vst.msk [vmem:[#allocation2 + $0xc0] sm:$0xf] %vm48_vm1, %v7026_v0 }
  0x44   :  { %5776 = vmatmul.mubr.msk.f32.gmra.mrb[2].mxu1 %vm43_vm0, %v127_v40  ;;  %6096 = vmatmul.mubr.msk.f32.gmra.mrb[2].mxu0 %vm43_vm0, %v2426_v41  ;;  %v135_v12 = vld [vmem:[#allocation2 + $0xd0] sm:$0xff]  ;;  %v7206_v16 = vld [vmem:[#allocation2 + $0x5b] sm:$0xff]  ;;  %v2658_v19 = vld [vmem:[#allocation2 + $0x63] sm:$0xff]  ;;  %74 = vst.msk [vmem:[#allocation2 + $0xe8] sm:$0xf] %vm48_vm1, %v7026_v0 }
  0x45   :  { %5778 = vmatprep.mubr.msk.f32.mxu1 %vm43_vm0, %v128_v42  ;;  %6098 = vmatprep.mubr.msk.f32.mxu0 %vm43_vm0, %v7172_v43  ;;  %v137_v18 = vld [vmem:[#allocation2 + $0xf8] sm:$0xff]  ;;  %v7215_v21 = vld [vmem:[#allocation2 + $0x83] sm:$0xff]  ;;  %v2660_v23 = vld [vmem:[#allocation2 + $0x8b] sm:$0xff]  ;;  %79 = vst.msk [vmem:[#allocation2 + $0x110] sm:$0xf] %vm48_vm1, %v7026_v0 }
  0x46   :  { %6531 = vmatpush3.bf16.msra.mxu0 %v6528_v36  ;;  %6449 = vmatprep.subr.bf16.mxu1 %v6448_v53  ;;  %v139_v22 = vld [vmem:[#allocation2 + $0x120] sm:$0xff]  ;;  %v7223_v25 = vld [vmem:[#allocation2 + $0xab] sm:$0xff]  ;;  %v603_v27 = vld [vmem:[#allocation6 + $0x58] sm:$0xff]  ;;  %84 = vst.msk [vmem:[#allocation2 + $0x138] sm:$0xf] %vm48_vm1, %v7026_v0 }
  0x47   :  { %6533 = vmatprep.subr.bf16.mxu0 %v6532_v44  ;;  %6451 = vmatpush3.bf16.msra.mxu1 %v6448_v53  ;;  %v353_v24 = vld [vmem:[#allocation2 + $0x1] sm:$0xff]  ;;  %v602_v26 = vld [vmem:[#allocation6 + $0x50] sm:$0xff]  ;;  %v358_v42 = vld [vmem:[#allocation2 + $0x59] sm:$0xff] }
  0x48   :  { %5779 = vmatmul.mubr.msk.f32.gmra.mrb[4].mxu1 %vm43_vm0, %v129_v46  ;;  %6099 = vmatmul.mubr.msk.f32.gmra.mrb[4].mxu0 %vm43_vm0, %v2428_v47  ;;  %v354_v28 = vld [vmem:[#allocation2 + $0x9] sm:$0xff]  ;;  %v2662_v29 = vld [vmem:[#allocation2 + $0xb3] sm:$0xff]  ;;  %v6456_v32 = vpack.c.bf16 %v603_v27, %v602_v26  ;;  %v830_v34 = vld [vmem:[#allocation6 + $0x60] sm:$0xff] }
  0x49   :  { %5781 = vmatprep.mubr.msk.f32.mxu1 %vm43_vm0, %v130_v48  ;;  %6101 = vmatprep.mubr.msk.f32.mxu0 %vm43_vm0, %v7180_v50  ;;  %v355_v30 = vld [vmem:[#allocation2 + $0x29] sm:$0xff]  ;;  %v7230_v31 = vld [vmem:[#allocation2 + $0xd3] sm:$0xff]  ;;  %v2664_v38 = vld [vmem:[#allocation2 + $0xdb] sm:$0xff] }
  0x4a   :  { %6453 = vmatprep.subr.bf16.mxu1 %v6452_v6  ;;  %v831_v35 = vld [vmem:[#allocation6 + $0x68] sm:$0xff]  ;;  %v356_v36 = vld [vmem:[#allocation2 + $0x31] sm:$0xff]  ;;  %v7237_v40 = vld [vmem:[#allocation2 + $0xfb] sm:$0xff] }
  0x4b   :  { %v357_v39 = vld [vmem:[#allocation2 + $0x51] sm:$0xff]  ;;  %v7239_v41 = vpack.c.bf16 %v831_v35, %v830_v34  ;;  %v359_v45 = vld [vmem:[#allocation2 + $0x79] sm:$0xff]  ;;  %v7246_v46 = vld [vmem:[#allocation2 + $0x123] sm:$0xff] }
  0x4c   :  { %5782 = vmatmul.mubr.msk.f32.gmra.mrb[6].mxu1 %vm43_vm0, %v131_v55  ;;  %6102 = vmatmul.mubr.msk.f32.gmra.mrb[6].mxu0 %vm43_vm0, %v2430_v56  ;;  %v360_v47 = vld [vmem:[#allocation2 + $0x81] sm:$0xff]  ;;  %v2668_v48 = vld [vmem:[#allocation2 + $0x12b] sm:$0xff]  ;;  %v3133_v53 = vld [vmem:[#allocation6 + $0x1b8] sm:$0xff] }
  0x4d   :  { %5784 = vmatprep.mubr.msk.f32.mxu1 %vm43_vm0, %v132_v57  ;;  %6124 = vmatprep.mubr.msk.f32.mxu0 %vm43_vm0, %v7189_v59  ;;  %v361_v49 = vld [vmem:[#allocation2 + $0xa1] sm:$0xff]  ;;  %v7254_v51 = vld [vmem:[#allocation2 + $0xc] sm:$0xff]  ;;  %v2884_v55 = vld [vmem:[#allocation2 + $0x14] sm:$0xff] }
  0x4e   :  { %v3132_v52 = vld [vmem:[#allocation6 + $0x1b0] sm:$0xff]  ;;  %v3360_v60 = vld [vmem:[#allocation6 + $0x1c0] sm:$0xff]  ;;  %v3361_v61 = vld [vmem:[#allocation6 + $0x1c8] sm:$0xff] }
  0x4f   :  { %v362_v54 = vld [vmem:[#allocation2 + $0xa9] sm:$0xff]  ;;  %v7261_v57 = vld [vmem:[#allocation2 + $0x34] sm:$0xff]  ;;  %v6544_v58 = vpack.c.bf16 %v3133_v53, %v3132_v52  ;;  %v2886_v63 = vld [vmem:[#allocation2 + $0x3c] sm:$0xff]  ;;  %v7271_v3 = vpack.c.bf16 %v3361_v61, %v3360_v60 }
  0x50   :  { %5785 = vmatmul.mubr.msk.f32.gmra.mrb[8].mxu1 %vm43_vm0, %v133_v1  ;;  %6125 = vmatmul.mubr.msk.f32.vlgmr.msra.gmra.mrb[0].mxu0 %vm43_vm0, %v2654_v4  ;;  %v363_v56 = vld [vmem:[#allocation2 + $0xc9] sm:$0xff]  ;;  %v364_v62 = vld [vmem:[#allocation2 + $0xd1] sm:$0xff]  ;;  %v7269_v2 = vld [vmem:[#allocation2 + $0x5c] sm:$0xff] }
  0x51   :  { %5787 = vmatprep.mubr.msk.f32.mxu1 %vm43_vm0, %v134_v5  ;;  %6535 = vmatpush3.bf16.msra.mxu0 %v6532_v44  ;;  %v2666_v44 = vld [vmem:[#allocation2 + $0x103] sm:$0xff]  ;;  %v365_v1 = vld [vmem:[#allocation2 + $0xf1] sm:$0xff]  ;;  %v366_v4 = vld [vmem:[#allocation2 + $0xf9] sm:$0xff] }
  0x52   :  { %6127 = vmatprep.mubr.msk.f32.mxu0 %vm43_vm0, %v7199_v7  ;;  %6537 = vmatprep.subr.bf16.mxu0 %v6536_v9  ;;  %v2888_v5 = vld [vmem:[#allocation2 + $0x64] sm:$0xff]  ;;  %v2890_v11 = vld [vmem:[#allocation2 + $0x8c] sm:$0xff]  ;;  %v2894_v26 = vld [vmem:[#allocation2 + $0xdc] sm:$0xff] }
  0x53   :  { %v368_v10 = vld [vmem:[#allocation2 + $0x121] sm:$0xff]  ;;  %v587_v27 = vld [vmem:[#allocation2 + $0x52] sm:$0xff] }
  0x54   :  { %5788 = vmatmul.mubr.msk.f32.gmra.mrb[10].mxu1 %vm43_vm0, %v135_v12  ;;  %6128 = vmatmul.mubr.msk.f32.gmra.mrb[2].mxu0 %vm43_vm0, %v2656_v14  ;;  %v583_v12 = vld [vmem:[#allocation2 + $0x2] sm:$0xff]  ;;  %v7286_v14 = vld [vmem:[#allocation2 + $0xac] sm:$0xff]  ;;  %v3114_v0 = vld [vmem:[#allocation2 + $0x15] sm:$0xff] }
  0x55   :  { %5790 = vmatprep.mubr.msk.f32.mxu1 %vm43_vm0, %v136_v15  ;;  %6130 = vmatprep.mubr.msk.f32.mxu0 %vm43_vm0, %v7206_v16  ;;  %v832_v15 = vld [vmem:[#allocation6 + $0x70] sm:$0xff]  ;;  %v596_v53 = vld [vmem:[#allocation2 + $0xfa] sm:$0xff]  ;;  %v813_v61 = vld [vmem:[#allocation2 + $0x3] sm:$0xff] }
  0x56   :  { %6539 = vmatpush3.bf16.msra.mxu0 %v6536_v9  ;;  %v7278_v9 = vld [vmem:[#allocation2 + $0x84] sm:$0xff]  ;;  %v7329_v34 = vld [vmem:[#allocation2 + $0xd] sm:$0xff] }
  0x57   :  { %6541 = vmatprep.subr.bf16.mxu0 %v7208_v17  ;;  %v3362_v35 = vld [vmem:[#allocation6 + $0x1d0] sm:$0xff] }
  0x58   :  { %5791 = vmatmul.mubr.msk.f32.gmra.mrb[12].mxu1 %vm43_vm0, %v137_v18  ;;  %6131 = vmatmul.mubr.msk.f32.gmra.mrb[4].mxu0 %vm43_vm0, %v2658_v19  ;;  %v2892_v18 = vld [vmem:[#allocation2 + $0xb4] sm:$0xff]  ;;  %v585_v19 = vld [vmem:[#allocation2 + $0x2a] sm:$0xff] }
  0x59   :  { %5793 = vmatprep.mubr.msk.f32.mxu1 %vm43_vm0, %v138_v20  ;;  %6133 = vmatprep.mubr.msk.f32.mxu0 %vm43_vm0, %v7215_v21  ;;  %v7293_v20 = vld [vmem:[#allocation2 + $0xd4] sm:$0xff] }
  0x5a   :  { %v3120_v60 = vld [vmem:[#allocation2 + $0x8d] sm:$0xff] }
  0x5c   :  { %5794 = vmatmul.mubr.msk.f32.gmra.mrb[14].mxu1 %vm43_vm0, %v139_v22  ;;  %6134 = vmatmul.mubr.msk.f32.gmra.mrb[6].mxu0 %vm43_vm0, %v2660_v23  ;;  %v1060_v23 = vld [vmem:[#allocation6 + $0x80] sm:$0xff] }
  0x5d   :  { %5804 = vmatprep.mubr.msk.f32.mxu1 %vm43_vm0, %v353_v24  ;;  %6136 = vmatprep.mubr.msk.f32.mxu0 %vm43_vm0, %v7223_v25  ;;  %v1061_v24 = vld [vmem:[#allocation6 + $0x88] sm:$0xff] }
  0x60   :  { %5805 = vmatmul.mubr.msk.f32.vlgmr.msra.gmra.mrb[0].mxu1 %vm43_vm0, %v354_v28  ;;  %6137 = vmatmul.mubr.msk.f32.gmra.mrb[8].mxu0 %vm43_vm0, %v2662_v29  ;;  %v7302_v28 = vld [vmem:[#allocation2 + $0xfc] sm:$0xff]  ;;  %v7304_v29 = vpack.c.bf16 %v1061_v24, %v1060_v23  ;;  %v7397_v24 = vld [vmem:[#allocation2 + $0xe] sm:$0xff] }
  0x61   :  { %5807 = vmatprep.mubr.msk.f32.mxu1 %vm43_vm0, %v355_v30  ;;  %6139 = vmatprep.mubr.msk.f32.mxu0 %vm43_vm0, %v7230_v31  ;;  %v589_v30 = vld [vmem:[#allocation2 + $0x7a] sm:$0xff]  ;;  %v821_v23 = vld [vmem:[#allocation2 + $0xa3] sm:$0xff] }
  0x62   :  { %6455 = vmatpush3.bf16.msra.mxu1 %v6452_v6  ;;  %v367_v6 = vld [vmem:[#allocation2 + $0x119] sm:$0xff] }
  0x63   :  { %6457 = vmatprep.subr.bf16.mxu1 %v6456_v32 }
  0x64   :  { %5808 = vmatmul.mubr.msk.f32.gmra.mrb[2].mxu1 %vm43_vm0, %v356_v36  ;;  %6140 = vmatmul.mubr.msk.f32.gmra.mrb[10].mxu0 %vm43_vm0, %v2664_v38  ;;  %v3363_v36 = vld [vmem:[#allocation6 + $0x1d8] sm:$0xff]  ;;  %v592_v38 = vld [vmem:[#allocation2 + $0xaa] sm:$0xff] }
  0x65   :  { %5810 = vmatprep.mubr.msk.f32.mxu1 %vm43_vm0, %v357_v39  ;;  %6142 = vmatprep.mubr.msk.f32.mxu0 %vm43_vm0, %v7237_v40  ;;  %v593_v39 = vld [vmem:[#allocation2 + $0xca] sm:$0xff] }
  0x66   :  { %6459 = vmatpush3.bf16.msra.mxu1 %v6456_v32  ;;  %v7312_v32 = vld [vmem:[#allocation2 + $0x124] sm:$0xff] }
  0x67   :  { %6461 = vmatprep.subr.bf16.mxu1 %v7239_v41 }
  0x68   :  { %5811 = vmatmul.mubr.msk.f32.gmra.mrb[4].mxu1 %vm43_vm0, %v358_v42  ;;  %6143 = vmatmul.mubr.msk.f32.gmra.mrb[12].mxu0 %vm43_vm0, %v2666_v44  ;;  %v6552_v42 = vpack.c.bf16 %v3363_v36, %v3362_v35  ;;  %v3590_v44 = vld [vmem:[#allocation6 + $0x1e0] sm:$0xff]  ;;  %v825_v35 = vld [vmem:[#allocation2 + $0xf3] sm:$0xff] }
  0x69   :  { %5813 = vmatprep.mubr.msk.f32.mxu1 %vm43_vm0, %v359_v45  ;;  %6145 = vmatprep.mubr.msk.f32.mxu0 %vm43_vm0, %v7246_v46  ;;  %v3591_v45 = vld [vmem:[#allocation6 + $0x1e8] sm:$0xff]  ;;  %v7414_v36 = vld [vmem:[#allocation2 + $0x5e] sm:$0xff] }
  0x6a   :  { %v7347_v52 = vpack.c.bf16 %v3591_v45, %v3590_v44  ;;  %v7433_v44 = vld [vmem:[#allocation2 + $0xae] sm:$0xff] }
  0x6b   :  { %v1292_v45 = vld [vmem:[#allocation6 + $0xb0] sm:$0xff] }
  0x6c   :  { %5814 = vmatmul.mubr.msk.f32.gmra.mrb[6].mxu1 %vm43_vm0, %v360_v47  ;;  %6146 = vmatmul.mubr.msk.f32.gmra.mrb[14].mxu0 %vm43_vm0, %v2668_v48  ;;  %v3116_v47 = vld [vmem:[#allocation2 + $0x3d] sm:$0xff]  ;;  %v595_v48 = vld [vmem:[#allocation2 + $0xf2] sm:$0xff] }
  0x6d   :  { %5816 = vmatprep.mubr.msk.f32.mxu1 %vm43_vm0, %v361_v49  ;;  %6156 = vmatprep.mubr.msk.f32.mxu0 %vm43_vm0, %v7254_v51  ;;  %v7345_v49 = vld [vmem:[#allocation2 + $0x5d] sm:$0xff] }
  0x70   :  { %5817 = vmatmul.mubr.msk.f32.gmra.mrb[8].mxu1 %vm43_vm0, %v362_v54  ;;  %6157 = vmatmul.mubr.msk.f32.vlgmr.msra.gmra.mrb[0].mxu0 %vm43_vm0, %v2884_v55  ;;  %v3118_v54 = vld [vmem:[#allocation2 + $0x65] sm:$0xff]  ;;  %v597_v55 = vld [vmem:[#allocation2 + $0x11a] sm:$0xff] }
  0x71   :  { %5819 = vmatprep.mubr.msk.f32.mxu1 %vm43_vm0, %v363_v56  ;;  %6543 = vmatpush3.bf16.msra.mxu0 %v7208_v17  ;;  %v833_v17 = vld [vmem:[#allocation6 + $0x78] sm:$0xff]  ;;  %v7354_v56 = vld [vmem:[#allocation2 + $0x85] sm:$0xff] }
  0x72   :  { %6159 = vmatprep.mubr.msk.f32.mxu0 %vm43_vm0, %v7261_v57  ;;  %6545 = vmatprep.subr.bf16.mxu0 %v6544_v58  ;;  %v6464_v22 = vpack.c.bf16 %v833_v17, %v832_v15  ;;  %v817_v15 = vld [vmem:[#allocation2 + $0x53] sm:$0xff]  ;;  %v7378_v17 = vld [vmem:[#allocation2 + $0xfd] sm:$0xff] }
  0x74   :  { %5820 = vmatmul.mubr.msk.f32.gmra.mrb[10].mxu1 %vm43_vm0, %v364_v62  ;;  %6160 = vmatmul.mubr.msk.f32.gmra.mrb[2].mxu0 %vm43_vm0, %v2886_v63  ;;  %v7362_v62 = vld [vmem:[#allocation2 + $0xad] sm:$0xff] }
  0x75   :  { %5822 = vmatprep.mubr.msk.f32.mxu1 %vm43_vm0, %v365_v1  ;;  %6162 = vmatprep.mubr.msk.f32.mxu0 %vm43_vm0, %v7269_v2  ;;  %v1062_v63 = vld [vmem:[#allocation6 + $0x90] sm:$0xff]  ;;  %v1063_v1 = vld [vmem:[#allocation6 + $0x98] sm:$0xff] }
  0x76   :  { %6547 = vmatpush3.bf16.msra.mxu0 %v6544_v58  ;;  %v598_v58 = vld [vmem:[#allocation2 + $0x122] sm:$0xff] }
  0x77   :  { %6549 = vmatprep.subr.bf16.mxu0 %v7271_v3 }
  0x78   :  { %5823 = vmatmul.mubr.msk.f32.gmra.mrb[12].mxu1 %vm43_vm0, %v366_v4  ;;  %6163 = vmatmul.mubr.msk.f32.gmra.mrb[4].mxu0 %vm43_vm0, %v2888_v5  ;;  %v815_v4 = vld [vmem:[#allocation2 + $0x2b] sm:$0xff]  ;;  %v7369_v5 = vld [vmem:[#allocation2 + $0xd5] sm:$0xff] }
  0x79   :  { %5825 = vmatprep.mubr.msk.f32.mxu1 %vm43_vm0, %v367_v6  ;;  %6165 = vmatprep.mubr.msk.f32.mxu0 %vm43_vm0, %v7278_v9  ;;  %v6472_v6 = vpack.c.bf16 %v1063_v1, %v1062_v63  ;;  %v7460_v63 = vld [vmem:[#allocation2 + $0x126] sm:$0xff] }
  0x7a   :  { %v1051_v1 = vld [vmem:[#allocation2 + $0xa4] sm:$0xff] }
  0x7c   :  { %5826 = vmatmul.mubr.msk.f32.gmra.mrb[14].mxu1 %vm43_vm0, %v368_v10  ;;  %6166 = vmatmul.mubr.msk.f32.gmra.mrb[6].mxu0 %vm43_vm0, %v2890_v11  ;;  %v1290_v10 = vld [vmem:[#allocation6 + $0xa0] sm:$0xff]  ;;  %v1291_v11 = vld [vmem:[#allocation6 + $0xa8] sm:$0xff] }
  0x7d   :  { %5836 = vmatprep.mubr.msk.f32.mxu1 %vm43_vm0, %v583_v12  ;;  %6168 = vmatprep.mubr.msk.f32.mxu0 %vm43_vm0, %v7286_v14  ;;  %v3124_v12 = vld [vmem:[#allocation2 + $0xdd] sm:$0xff] }
  0x80   :  { %5837 = vmatmul.mubr.msk.f32.vlgmr.msra.gmra.mrb[0].mxu1 %vm43_vm0, %v7160_v33  ;;  %6169 = vmatmul.mubr.msk.f32.gmra.mrb[8].mxu0 %vm43_vm0, %v2892_v18  ;;  %v2896_v33 = vld [vmem:[#allocation2 + $0x104] sm:$0xff]  ;;  %v7380_v18 = vpack.c.bf16 %v1291_v11, %v1290_v10  ;;  %v1053_v10 = vld [vmem:[#allocation2 + $0xcc] sm:$0xff]  ;;  %v7477_v11 = vld [vmem:[#allocation2 + $0x37] sm:$0xff] }
  0x81   :  { %5839 = vmatprep.mubr.msk.f32.mxu1 %vm43_vm0, %v585_v19  ;;  %6171 = vmatprep.mubr.msk.f32.mxu0 %vm43_vm0, %v7293_v20  ;;  %v819_v19 = vld [vmem:[#allocation2 + $0x7b] sm:$0xff] }
  0x82   :  { %6463 = vmatpush3.bf16.msra.mxu1 %v7239_v41  ;;  %v7337_v41 = vld [vmem:[#allocation2 + $0x35] sm:$0xff] }
  0x83   :  { %6465 = vmatprep.subr.bf16.mxu1 %v6464_v22 }
  0x84   :  { %5840 = vmatmul.mubr.msk.f32.gmra.mrb[2].mxu1 %vm43_vm0, %v7166_v37  ;;  %6172 = vmatmul.mubr.msk.f32.gmra.mrb[10].mxu0 %vm43_vm0, %v2894_v26  ;;  %v2898_v37 = vld [vmem:[#allocation2 + $0x12c] sm:$0xff] }
  0x85   :  { %5842 = vmatprep.mubr.msk.f32.mxu1 %vm43_vm0, %v587_v27  ;;  %6174 = vmatprep.mubr.msk.f32.mxu0 %vm43_vm0, %v7302_v28  ;;  %v3592_v26 = vld [vmem:[#allocation6 + $0x1f0] sm:$0xff]  ;;  %v3593_v27 = vld [vmem:[#allocation6 + $0x1f8] sm:$0xff] }
  0x86   :  { %6467 = vmatpush3.bf16.msra.mxu1 %v6464_v22  ;;  %v7388_v22 = vld [vmem:[#allocation2 + $0x125] sm:$0xff] }
  0x87   :  { %6469 = vmatprep.subr.bf16.mxu1 %v7304_v29 }
  0x88   :  { %5843 = vmatmul.mubr.msk.f32.gmra.mrb[4].mxu1 %vm43_vm0, %v7172_v43  ;;  %6175 = vmatmul.mubr.msk.f32.gmra.mrb[12].mxu0 %vm43_vm0, %v2896_v33  ;;  %v591_v43 = vld [vmem:[#allocation2 + $0xa2] sm:$0xff]  ;;  %v7405_v33 = vld [vmem:[#allocation2 + $0x36] sm:$0xff] }
  0x89   :  { %5845 = vmatprep.mubr.msk.f32.mxu1 %vm43_vm0, %v589_v30  ;;  %6177 = vmatprep.mubr.msk.f32.mxu0 %vm43_vm0, %v7312_v32  ;;  %v6560_v30 = vpack.c.bf16 %v3593_v27, %v3592_v26  ;;  %v7496_v26 = vld [vmem:[#allocation2 + $0x87] sm:$0xff] }
  0x8a   :  { %v1273_v27 = vld [vmem:[#allocation2 + $0x5] sm:$0xff] }
  0x8c   :  { %5846 = vmatmul.mubr.msk.f32.gmra.mrb[6].mxu1 %vm43_vm0, %v7180_v50  ;;  %6178 = vmatmul.mubr.msk.f32.gmra.mrb[14].mxu0 %vm43_vm0, %v2898_v37  ;;  %v594_v50 = vld [vmem:[#allocation2 + $0xd2] sm:$0xff]  ;;  %v3820_v37 = vld [vmem:[#allocation6 + $0x200] sm:$0xff] }
  0x8d   :  { %5848 = vmatprep.mubr.msk.f32.mxu1 %vm43_vm0, %v591_v43  ;;  %6188 = vmatprep.mubr.msk.f32.mxu0 %vm43_vm0, %v7329_v34  ;;  %v3821_v43 = vld [vmem:[#allocation6 + $0x208] sm:$0xff] }
  0x90   :  { %5849 = vmatmul.mubr.msk.f32.gmra.mrb[8].mxu1 %vm43_vm0, %v592_v38  ;;  %6189 = vmatmul.mubr.msk.f32.vlgmr.msra.gmra.mrb[0].mxu0 %vm43_vm0, %v3114_v0  ;;  %v7416_v38 = vpack.c.bf16 %v3821_v43, %v3820_v37  ;;  %v827_v0 = vld [vmem:[#allocation2 + $0x11b] sm:$0xff]  ;;  %v1275_v37 = vld [vmem:[#allocation2 + $0x2d] sm:$0xff] }
  0x91   :  { %5851 = vmatprep.mubr.msk.f32.mxu1 %vm43_vm0, %v593_v39  ;;  %6551 = vmatpush3.bf16.msra.mxu0 %v7271_v3  ;;  %v3122_v3 = vld [vmem:[#allocation2 + $0xb5] sm:$0xff]  ;;  %v7424_v39 = vld [vmem:[#allocation2 + $0x86] sm:$0xff] }
  0x92   :  { %6191 = vmatprep.mubr.msk.f32.mxu0 %vm43_vm0, %v7337_v41  ;;  %6553 = vmatprep.subr.bf16.mxu0 %v6552_v42  ;;  %v7513_v43 = vld [vmem:[#allocation2 + $0xd7] sm:$0xff] }
  0x94   :  { %5852 = vmatmul.mubr.msk.f32.gmra.mrb[10].mxu1 %vm43_vm0, %v594_v50  ;;  %6192 = vmatmul.mubr.msk.f32.gmra.mrb[2].mxu0 %vm43_vm0, %v3116_v47  ;;  %v1293_v50 = vld [vmem:[#allocation6 + $0xb8] sm:$0xff]  ;;  %v1045_v47 = vld [vmem:[#allocation2 + $0x2c] sm:$0xff] }
  0x95   :  { %5854 = vmatprep.mubr.msk.f32.mxu1 %vm43_vm0, %v595_v48  ;;  %6194 = vmatprep.mubr.msk.f32.mxu0 %vm43_vm0, %v7345_v49  ;;  %v7441_v48 = vld [vmem:[#allocation2 + $0xd6] sm:$0xff] }
  0x96   :  { %6555 = vmatpush3.bf16.msra.mxu0 %v6552_v42  ;;  %v1043_v42 = vld [vmem:[#allocation2 + $0x4] sm:$0xff] }
  0x97   :  { %6557 = vmatprep.subr.bf16.mxu0 %v7347_v52 }
  0x98   :  { %5855 = vmatmul.mubr.msk.f32.gmra.mrb[12].mxu1 %vm43_vm0, %v596_v53  ;;  %6195 = vmatmul.mubr.msk.f32.gmra.mrb[4].mxu0 %vm43_vm0, %v3118_v54  ;;  %v1520_v53 = vld [vmem:[#allocation6 + $0xc0] sm:$0xff]  ;;  %v1521_v54 = vld [vmem:[#allocation6 + $0xc8] sm:$0xff] }
  0x99   :  { %5857 = vmatprep.mubr.msk.f32.mxu1 %vm43_vm0, %v597_v55  ;;  %6197 = vmatprep.mubr.msk.f32.mxu0 %vm43_vm0, %v7354_v56  ;;  %v1047_v55 = vld [vmem:[#allocation2 + $0x54] sm:$0xff] }
  0x9c   :  { %5858 = vmatmul.mubr.msk.f32.gmra.mrb[14].mxu1 %vm43_vm0, %v598_v58  ;;  %6198 = vmatmul.mubr.msk.f32.gmra.mrb[6].mxu0 %vm43_vm0, %v3120_v60  ;;  %v7450_v58 = vld [vmem:[#allocation2 + $0xfe] sm:$0xff]  ;;  %v7452_v60 = vpack.c.bf16 %v1521_v54, %v1520_v53  ;;  %v1283_v53 = vld [vmem:[#allocation2 + $0xcd] sm:$0xff] }
  0x9d   :  { %5868 = vmatprep.mubr.msk.f32.mxu1 %vm43_vm0, %v813_v61  ;;  %6200 = vmatprep.mubr.msk.f32.mxu0 %vm43_vm0, %v7362_v62  ;;  %v1049_v61 = vld [vmem:[#allocation2 + $0x7c] sm:$0xff] }
  0x9e   :  { %v7549_v54 = vld [vmem:[#allocation2 + $0x38] sm:$0xff] }
  0xa0   :  { %5869 = vmatmul.mubr.msk.f32.vlgmr.msra.gmra.mrb[0].mxu1 %vm43_vm0, %v7189_v59  ;;  %6201 = vmatmul.mubr.msk.f32.gmra.mrb[8].mxu0 %vm43_vm0, %v3122_v3  ;;  %v3126_v59 = vld [vmem:[#allocation2 + $0x105] sm:$0xff]  ;;  %v7469_v3 = vld [vmem:[#allocation2 + $0xf] sm:$0xff] }
  0xa1   :  { %5871 = vmatprep.mubr.msk.f32.mxu1 %vm43_vm0, %v815_v4  ;;  %6203 = vmatprep.mubr.msk.f32.mxu0 %vm43_vm0, %v7369_v5  ;;  %v3822_v4 = vld [vmem:[#allocation6 + $0x210] sm:$0xff] }
  0xa2   :  { %6471 = vmatpush3.bf16.msra.mxu1 %v7304_v29  ;;  %v823_v29 = vld [vmem:[#allocation2 + $0xcb] sm:$0xff] }
  0xa3   :  { %6473 = vmatprep.subr.bf16.mxu1 %v6472_v6 }
  0xa4   :  { %5872 = vmatmul.mubr.msk.f32.gmra.mrb[2].mxu1 %vm43_vm0, %v7199_v7  ;;  %6204 = vmatmul.mubr.msk.f32.gmra.mrb[10].mxu0 %vm43_vm0, %v3124_v12  ;;  %v3128_v7 = vld [vmem:[#allocation2 + $0x12d] sm:$0xff] }
  0xa5   :  { %5874 = vmatprep.mubr.msk.f32.mxu1 %vm43_vm0, %v817_v15  ;;  %6206 = vmatprep.mubr.msk.f32.mxu0 %vm43_vm0, %v7378_v17  ;;  %v4050_v15 = vld [vmem:[#allocation6 + $0x220] sm:$0xff] }
  0xa6   :  { %6475 = vmatpush3.bf16.msra.mxu1 %v6472_v6  ;;  %v3823_v6 = vld [vmem:[#allocation6 + $0x218] sm:$0xff] }
  0xa7   :  { %6477 = vmatprep.subr.bf16.mxu1 %v7380_v18  ;;  %v6568_v12 = vpack.c.bf16 %v3823_v6, %v3822_v4  ;;  %v7568_v4 = vld [vmem:[#allocation2 + $0x88] sm:$0xff] }
  0xa8   :  { %5875 = vmatmul.mubr.msk.f32.gmra.mrb[4].mxu1 %vm43_vm0, %v7206_v16  ;;  %6207 = vmatmul.mubr.msk.f32.gmra.mrb[12].mxu0 %vm43_vm0, %v3126_v59  ;;  %v3344_v16 = vld [vmem:[#allocation2 + $0x16] sm:$0xff]  ;;  %v1503_v6 = vld [vmem:[#allocation2 + $0x6] sm:$0xff] }
  0xa9   :  { %5877 = vmatprep.mubr.msk.f32.mxu1 %vm43_vm0, %v819_v19  ;;  %6209 = vmatprep.mubr.msk.f32.mxu0 %vm43_vm0, %v7388_v22  ;;  %v1055_v59 = vld [vmem:[#allocation2 + $0xf4] sm:$0xff]  ;;  %v7486_v19 = vld [vmem:[#allocation2 + $0x5f] sm:$0xff] }
  0xac   :  { %5878 = vmatmul.mubr.msk.f32.gmra.mrb[6].mxu1 %vm43_vm0, %v7215_v21  ;;  %6210 = vmatmul.mubr.msk.f32.gmra.mrb[14].mxu0 %vm43_vm0, %v3128_v7  ;;  %v3346_v21 = vld [vmem:[#allocation2 + $0x3e] sm:$0xff] }
  0xad   :  { %5880 = vmatprep.mubr.msk.f32.mxu1 %vm43_vm0, %v821_v23  ;;  %6220 = vmatprep.mubr.msk.f32.mxu0 %vm43_vm0, %v7397_v24  ;;  %v1057_v23 = vld [vmem:[#allocation2 + $0x11c] sm:$0xff] }
  0xb0   :  { %5881 = vmatmul.mubr.msk.f32.gmra.mrb[8].mxu1 %vm43_vm0, %v7223_v25  ;;  %6221 = vmatmul.mubr.msk.f32.vlgmr.msra.gmra.mrb[0].mxu0 %vm43_vm0, %v3344_v16  ;;  %v3348_v25 = vld [vmem:[#allocation2 + $0x66] sm:$0xff]  ;;  %v7505_v16 = vld [vmem:[#allocation2 + $0xaf] sm:$0xff] }
  0xb1   :  { %5883 = vmatprep.mubr.msk.f32.mxu1 %vm43_vm0, %v823_v29  ;;  %6559 = vmatpush3.bf16.msra.mxu0 %v7347_v52  ;;  %v6480_v52 = vpack.c.bf16 %v1293_v50, %v1292_v45  ;;  %v1522_v29 = vld [vmem:[#allocation6 + $0xd0] sm:$0xff]  ;;  %v7532_v45 = vld [vmem:[#allocation2 + $0x127] sm:$0xff] }
  0xb2   :  { %6223 = vmatprep.mubr.msk.f32.mxu0 %vm43_vm0, %v7405_v33  ;;  %6561 = vmatprep.subr.bf16.mxu0 %v6560_v30  ;;  %v1281_v50 = vld [vmem:[#allocation2 + $0xa5] sm:$0xff] }
  0xb4   :  { %5884 = vmatmul.mubr.msk.f32.gmra.mrb[10].mxu1 %vm43_vm0, %v7230_v31  ;;  %6224 = vmatmul.mubr.msk.f32.gmra.mrb[2].mxu0 %vm43_vm0, %v3346_v21  ;;  %v3350_v31 = vld [vmem:[#allocation2 + $0x8e] sm:$0xff] }
  0xb5   :  { %5886 = vmatprep.mubr.msk.f32.mxu1 %vm43_vm0, %v825_v35  ;;  %6226 = vmatprep.mubr.msk.f32.mxu0 %vm43_vm0, %v7414_v36  ;;  %v1750_v35 = vld [vmem:[#allocation6 + $0xe0] sm:$0xff] }
  0xb6   :  { %6563 = vmatpush3.bf16.msra.mxu0 %v6560_v30  ;;  %v1523_v30 = vld [vmem:[#allocation6 + $0xd8] sm:$0xff] }
  0xb7   :  { %6565 = vmatprep.subr.bf16.mxu0 %v7416_v38  ;;  %v6488_v21 = vpack.c.bf16 %v1523_v30, %v1522_v29  ;;  %v7604_v29 = vld [vmem:[#allocation2 + $0x128] sm:$0xff] }
  0xb8   :  { %5887 = vmatmul.mubr.msk.f32.gmra.mrb[12].mxu1 %vm43_vm0, %v7237_v40  ;;  %6227 = vmatmul.mubr.msk.f32.gmra.mrb[4].mxu0 %vm43_vm0, %v3348_v25  ;;  %v3352_v40 = vld [vmem:[#allocation2 + $0xb6] sm:$0xff]  ;;  %v1511_v30 = vld [vmem:[#allocation2 + $0xa6] sm:$0xff] }
  0xb9   :  { %5889 = vmatprep.mubr.msk.f32.mxu1 %vm43_vm0, %v827_v0  ;;  %6229 = vmatprep.mubr.msk.f32.mxu0 %vm43_vm0, %v7424_v39  ;;  %v1277_v25 = vld [vmem:[#allocation2 + $0x55] sm:$0xff]  ;;  %v7522_v0 = vld [vmem:[#allocation2 + $0xff] sm:$0xff] }
  0xbc   :  { %5890 = vmatmul.mubr.msk.f32.gmra.mrb[14].mxu1 %vm43_vm0, %v7246_v46  ;;  %6230 = vmatmul.mubr.msk.f32.gmra.mrb[6].mxu0 %vm43_vm0, %v3350_v31  ;;  %v3354_v46 = vld [vmem:[#allocation2 + $0xde] sm:$0xff] }
  0xbd   :  { %5900 = vmatprep.mubr.msk.f32.mxu1 %vm43_vm0, %v1043_v42  ;;  %6232 = vmatprep.mubr.msk.f32.mxu0 %vm43_vm0, %v7433_v44  ;;  %v1279_v42 = vld [vmem:[#allocation2 + $0x7d] sm:$0xff] }
  0xc0   :  { %5901 = vmatmul.mubr.msk.f32.vlgmr.msra.gmra.mrb[0].mxu1 %vm43_vm0, %v7254_v51  ;;  %6233 = vmatmul.mubr.msk.f32.gmra.mrb[8].mxu0 %vm43_vm0, %v3352_v40  ;;  %v3356_v51 = vld [vmem:[#allocation2 + $0x106] sm:$0xff]  ;;  %v7541_v40 = vld [vmem:[#allocation2 + $0x10] sm:$0xff] }
  0xc1   :  { %5903 = vmatprep.mubr.msk.f32.mxu1 %vm43_vm0, %v1045_v47  ;;  %6235 = vmatprep.mubr.msk.f32.mxu0 %vm43_vm0, %v7441_v48  ;;  %v4052_v47 = vld [vmem:[#allocation6 + $0x230] sm:$0xff] }
  0xc2   :  { %6479 = vmatpush3.bf16.msra.mxu1 %v7380_v18  ;;  %v4051_v18 = vld [vmem:[#allocation6 + $0x228] sm:$0xff] }
  0xc3   :  { %6481 = vmatprep.subr.bf16.mxu1 %v6480_v52  ;;  %v7488_v7 = vpack.c.bf16 %v4051_v18, %v4050_v15  ;;  %v1505_v15 = vld [vmem:[#allocation2 + $0x2e] sm:$0xff]  ;;  %v7585_v18 = vld [vmem:[#allocation2 + $0xd8] sm:$0xff] }
  0xc4   :  { %5904 = vmatmul.mubr.msk.f32.gmra.mrb[2].mxu1 %vm43_vm0, %v7261_v57  ;;  %6236 = vmatmul.mubr.msk.f32.gmra.mrb[10].mxu0 %vm43_vm0, %v3354_v46  ;;  %v3358_v57 = vld [vmem:[#allocation2 + $0x12e] sm:$0xff] }
  0xc5   :  { %5906 = vmatprep.mubr.msk.f32.mxu1 %vm43_vm0, %v1047_v55  ;;  %6238 = vmatprep.mubr.msk.f32.mxu0 %vm43_vm0, %v7450_v58  ;;  %v4280_v55 = vld [vmem:[#allocation6 + $0x240] sm:$0xff] }
  0xc6   :  { %6483 = vmatpush3.bf16.msra.mxu1 %v6480_v52  ;;  %v4053_v52 = vld [vmem:[#allocation6 + $0x238] sm:$0xff] }
  0xc7   :  { %6485 = vmatprep.subr.bf16.mxu1 %v7452_v60  ;;  %v6576_v46 = vpack.c.bf16 %v4053_v52, %v4052_v47  ;;  %v7640_v47 = vld [vmem:[#allocation2 + $0x89] sm:$0xff] }
  0xc8   :  { %5907 = vmatmul.mubr.msk.f32.gmra.mrb[4].mxu1 %vm43_vm0, %v7269_v2  ;;  %6239 = vmatmul.mubr.msk.f32.gmra.mrb[12].mxu0 %vm43_vm0, %v3356_v51  ;;  %v3574_v2 = vld [vmem:[#allocation2 + $0x17] sm:$0xff]  ;;  %v1733_v52 = vld [vmem:[#allocation2 + $0x7] sm:$0xff] }
  0xc9   :  { %5909 = vmatprep.mubr.msk.f32.mxu1 %vm43_vm0, %v1049_v61  ;;  %6241 = vmatprep.mubr.msk.f32.mxu0 %vm43_vm0, %v7460_v63  ;;  %v1285_v51 = vld [vmem:[#allocation2 + $0xf5] sm:$0xff]  ;;  %v7558_v61 = vld [vmem:[#allocation2 + $0x60] sm:$0xff] }
  0xcc   :  { %5910 = vmatmul.mubr.msk.f32.gmra.mrb[6].mxu1 %vm43_vm0, %v7278_v9  ;;  %6242 = vmatmul.mubr.msk.f32.gmra.mrb[14].mxu0 %vm43_vm0, %v3358_v57  ;;  %v3576_v9 = vld [vmem:[#allocation2 + $0x3f] sm:$0xff] }
  0xcd   :  { %5912 = vmatprep.mubr.msk.f32.mxu1 %vm43_vm0, %v1051_v1  ;;  %6252 = vmatprep.mubr.msk.f32.mxu0 %vm43_vm0, %v7469_v3  ;;  %v1287_v1 = vld [vmem:[#allocation2 + $0x11d] sm:$0xff] }
  0xd0   :  { %5913 = vmatmul.mubr.msk.f32.gmra.mrb[8].mxu1 %vm43_vm0, %v7286_v14  ;;  %6253 = vmatmul.mubr.msk.f32.vlgmr.msra.gmra.mrb[0].mxu0 %vm43_vm0, %v3574_v2  ;;  %v3578_v14 = vld [vmem:[#allocation2 + $0x67] sm:$0xff]  ;;  %v7577_v2 = vld [vmem:[#allocation2 + $0xb0] sm:$0xff] }
  0xd1   :  { %5915 = vmatprep.mubr.msk.f32.mxu1 %vm43_vm0, %v1053_v10  ;;  %6567 = vmatpush3.bf16.msra.mxu0 %v7416_v38  ;;  %v1751_v38 = vld [vmem:[#allocation6 + $0xe8] sm:$0xff]  ;;  %v1752_v10 = vld [vmem:[#allocation6 + $0xf0] sm:$0xff] }
  0xd2   :  { %6255 = vmatprep.mubr.msk.f32.mxu0 %vm43_vm0, %v7477_v11  ;;  %6569 = vmatprep.subr.bf16.mxu0 %v6568_v12  ;;  %v7524_v31 = vpack.c.bf16 %v1751_v38, %v1750_v35  ;;  %v1513_v35 = vld [vmem:[#allocation2 + $0xce] sm:$0xff]  ;;  %v7621_v38 = vld [vmem:[#allocation2 + $0x39] sm:$0xff] }
  0xd4   :  { %5916 = vmatmul.mubr.msk.f32.gmra.mrb[10].mxu1 %vm43_vm0, %v7293_v20  ;;  %6256 = vmatmul.mubr.msk.f32.gmra.mrb[2].mxu0 %vm43_vm0, %v3576_v9  ;;  %v3580_v20 = vld [vmem:[#allocation2 + $0x8f] sm:$0xff] }
  0xd5   :  { %5918 = vmatprep.mubr.msk.f32.mxu1 %vm43_vm0, %v1055_v59  ;;  %6258 = vmatprep.mubr.msk.f32.mxu0 %vm43_vm0, %v7486_v19  ;;  %v1980_v59 = vld [vmem:[#allocation6 + $0x100] sm:$0xff] }
  0xd6   :  { %6571 = vmatpush3.bf16.msra.mxu0 %v6568_v12  ;;  %v1753_v12 = vld [vmem:[#allocation6 + $0xf8] sm:$0xff] }
  0xd7   :  { %6573 = vmatprep.subr.bf16.mxu0 %v7488_v7  ;;  %v6496_v9 = vpack.c.bf16 %v1753_v12, %v1752_v10  ;;  %v7676_v10 = vld [vmem:[#allocation2 + $0x129] sm:$0xff] }
  0xd8   :  { %5919 = vmatmul.mubr.msk.f32.gmra.mrb[12].mxu1 %vm43_vm0, %v7302_v28  ;;  %6259 = vmatmul.mubr.msk.f32.gmra.mrb[4].mxu0 %vm43_vm0, %v3578_v14  ;;  %v3582_v28 = vld [vmem:[#allocation2 + $0xb7] sm:$0xff]  ;;  %v1741_v12 = vld [vmem:[#allocation2 + $0xa7] sm:$0xff] }
  0xd9   :  { %5921 = vmatprep.mubr.msk.f32.mxu1 %vm43_vm0, %v1057_v23  ;;  %6261 = vmatprep.mubr.msk.f32.mxu0 %vm43_vm0, %v7496_v26  ;;  %v1507_v14 = vld [vmem:[#allocation2 + $0x56] sm:$0xff]  ;;  %v7594_v23 = vld [vmem:[#allocation2 + $0x100] sm:$0xff] }
  0xdc   :  { %5922 = vmatmul.mubr.msk.f32.gmra.mrb[14].mxu1 %vm43_vm0, %v7312_v32  ;;  %6262 = vmatmul.mubr.msk.f32.gmra.mrb[6].mxu0 %vm43_vm0, %v3580_v20  ;;  %v3584_v32 = vld [vmem:[#allocation2 + $0xdf] sm:$0xff] }
  0xdd   :  { %5932 = vmatprep.mubr.msk.f32.mxu1 %vm43_vm0, %v1273_v27  ;;  %6264 = vmatprep.mubr.msk.f32.mxu0 %vm43_vm0, %v7505_v16  ;;  %v1509_v27 = vld [vmem:[#allocation2 + $0x7e] sm:$0xff] }
  0xe0   :  { %5933 = vmatmul.mubr.msk.f32.vlgmr.msra.gmra.mrb[0].mxu1 %vm43_vm0, %v7329_v34  ;;  %6265 = vmatmul.mubr.msk.f32.gmra.mrb[8].mxu0 %vm43_vm0, %v3582_v28  ;;  %v3586_v34 = vld [vmem:[#allocation2 + $0x107] sm:$0xff]  ;;  %v7613_v28 = vld [vmem:[#allocation2 + $0x11] sm:$0xff] }
  0xe1   :  { %5935 = vmatprep.mubr.msk.f32.mxu1 %vm43_vm0, %v1275_v37  ;;  %6267 = vmatprep.mubr.msk.f32.mxu0 %vm43_vm0, %v7513_v43  ;;  %v4282_v37 = vld [vmem:[#allocation6 + $0x250] sm:$0xff] }
  0xe2   :  { %6487 = vmatpush3.bf16.msra.mxu1 %v7452_v60  ;;  %v4281_v60 = vld [vmem:[#allocation6 + $0x248] sm:$0xff] }
  0xe3   :  { %6489 = vmatprep.subr.bf16.mxu1 %v6488_v21  ;;  %v7560_v57 = vpack.c.bf16 %v4281_v60, %v4280_v55  ;;  %v1735_v55 = vld [vmem:[#allocation2 + $0x2f] sm:$0xff]  ;;  %v7657_v60 = vld [vmem:[#allocation2 + $0xd9] sm:$0xff] }
  0xe4   :  { %5936 = vmatmul.mubr.msk.f32.gmra.mrb[2].mxu1 %vm43_vm0, %v7337_v41  ;;  %6268 = vmatmul.mubr.msk.f32.gmra.mrb[10].mxu0 %vm43_vm0, %v3584_v32  ;;  %v3588_v41 = vld [vmem:[#allocation2 + $0x12f] sm:$0xff] }
  0xe5   :  { %5938 = vmatprep.mubr.msk.f32.mxu1 %vm43_vm0, %v1277_v25  ;;  %6270 = vmatprep.mubr.msk.f32.mxu0 %vm43_vm0, %v7522_v0  ;;  %v4510_v25 = vld [vmem:[#allocation6 + $0x260] sm:$0xff] }
  0xe6   :  { %6491 = vmatpush3.bf16.msra.mxu1 %v6488_v21  ;;  %v4283_v21 = vld [vmem:[#allocation6 + $0x258] sm:$0xff] }
  0xe7   :  { %6493 = vmatprep.subr.bf16.mxu1 %v7524_v31  ;;  %v6584_v32 = vpack.c.bf16 %v4283_v21, %v4282_v37  ;;  %v4269_v37 = vld [vmem:[#allocation2 + $0x8a] sm:$0xff] }
  0xe8   :  { %5939 = vmatmul.mubr.msk.f32.gmra.mrb[4].mxu1 %vm43_vm0, %v7345_v49  ;;  %6271 = vmatmul.mubr.msk.f32.gmra.mrb[12].mxu0 %vm43_vm0, %v3586_v34  ;;  %v3804_v49 = vld [vmem:[#allocation2 + $0x18] sm:$0xff]  ;;  %v1963_v21 = vld [vmem:[#allocation2 + $0x8] sm:$0xff] }
  0xe9   :  { %5941 = vmatprep.mubr.msk.f32.mxu1 %vm43_vm0, %v1279_v42  ;;  %6273 = vmatprep.mubr.msk.f32.mxu0 %vm43_vm0, %v7532_v45  ;;  %v1515_v34 = vld [vmem:[#allocation2 + $0xf6] sm:$0xff]  ;;  %v7630_v42 = vld [vmem:[#allocation2 + $0x61] sm:$0xff] }
  0xec   :  { %5942 = vmatmul.mubr.msk.f32.gmra.mrb[6].mxu1 %vm43_vm0, %v7354_v56  ;;  %6274 = vmatmul.mubr.msk.f32.gmra.mrb[14].mxu0 %vm43_vm0, %v3588_v41  ;;  %v3806_v56 = vld [vmem:[#allocation2 + $0x40] sm:$0xff] }
  0xed   :  { %5944 = vmatprep.mubr.msk.f32.mxu1 %vm43_vm0, %v1281_v50  ;;  %6284 = vmatprep.mubr.msk.f32.mxu0 %vm43_vm0, %v7541_v40  ;;  %v1517_v50 = vld [vmem:[#allocation2 + $0x11e] sm:$0xff] }
  0xf0   :  { %5945 = vmatmul.mubr.msk.f32.gmra.mrb[8].mxu1 %vm43_vm0, %v7362_v62  ;;  %6285 = vmatmul.mubr.msk.f32.vlgmr.msra.gmra.mrb[0].mxu0 %vm43_vm0, %v3804_v49  ;;  %v3808_v62 = vld [vmem:[#allocation2 + $0x68] sm:$0xff]  ;;  %v7649_v49 = vld [vmem:[#allocation2 + $0xb1] sm:$0xff] }
  0xf1   :  { %5947 = vmatprep.mubr.msk.f32.mxu1 %vm43_vm0, %v1283_v53  ;;  %6575 = vmatpush3.bf16.msra.mxu0 %v7488_v7  ;;  %v1981_v7 = vld [vmem:[#allocation6 + $0x108] sm:$0xff]  ;;  %v1982_v53 = vld [vmem:[#allocation6 + $0x110] sm:$0xff] }
  0xf2   :  { %6287 = vmatprep.mubr.msk.f32.mxu0 %vm43_vm0, %v7549_v54  ;;  %6577 = vmatprep.subr.bf16.mxu0 %v6576_v46  ;;  %v7596_v20 = vpack.c.bf16 %v1981_v7, %v1980_v59  ;;  %v1743_v59 = vld [vmem:[#allocation2 + $0xcf] sm:$0xff]  ;;  %v4265_v7 = vld [vmem:[#allocation2 + $0x3a] sm:$0xff] }
  0xf4   :  { %5948 = vmatmul.mubr.msk.f32.gmra.mrb[10].mxu1 %vm43_vm0, %v7369_v5  ;;  %6288 = vmatmul.mubr.msk.f32.gmra.mrb[2].mxu0 %vm43_vm0, %v3806_v56  ;;  %v3810_v5 = vld [vmem:[#allocation2 + $0x90] sm:$0xff] }
  0xf5   :  { %5950 = vmatprep.mubr.msk.f32.mxu1 %vm43_vm0, %v1285_v51  ;;  %6290 = vmatprep.mubr.msk.f32.mxu0 %vm43_vm0, %v7558_v61  ;;  %v2210_v51 = vld [vmem:[#allocation6 + $0x120] sm:$0xff] }
  0xf6   :  { %6579 = vmatpush3.bf16.msra.mxu0 %v6576_v46  ;;  %v1983_v46 = vld [vmem:[#allocation6 + $0x118] sm:$0xff] }
  0xf7   :  { %6581 = vmatprep.subr.bf16.mxu0 %v7560_v57  ;;  %v6504_v56 = vpack.c.bf16 %v1983_v46, %v1982_v53  ;;  %v4742_v53 = vld [vmem:[#allocation6 + $0x290] sm:$0xff]  ;;  %v4743_v46 = vld [vmem:[#allocation6 + $0x298] sm:$0xff] }
  0xf8   :  { %5951 = vmatmul.mubr.msk.f32.gmra.mrb[12].mxu1 %vm43_vm0, %v7378_v17  ;;  %6291 = vmatmul.mubr.msk.f32.gmra.mrb[4].mxu0 %vm43_vm0, %v3808_v62  ;;  %v3812_v17 = vld [vmem:[#allocation2 + $0xb8] sm:$0xff] }
  0xf9   :  { %5953 = vmatprep.mubr.msk.f32.mxu1 %vm43_vm0, %v1287_v1  ;;  %6293 = vmatprep.mubr.msk.f32.mxu0 %vm43_vm0, %v7568_v4  ;;  %v1737_v62 = vld [vmem:[#allocation2 + $0x57] sm:$0xff]  ;;  %v7666_v1 = vld [vmem:[#allocation2 + $0x101] sm:$0xff] }
  0xfc   :  { %5954 = vmatmul.mubr.msk.f32.gmra.mrb[14].mxu1 %vm43_vm0, %v7388_v22  ;;  %6294 = vmatmul.mubr.msk.f32.gmra.mrb[6].mxu0 %vm43_vm0, %v3810_v5  ;;  %v3814_v22 = vld [vmem:[#allocation2 + $0xe0] sm:$0xff] }
  0xfd   :  { %5964 = vmatprep.mubr.msk.f32.mxu1 %vm43_vm0, %v1503_v6  ;;  %6296 = vmatprep.mubr.msk.f32.mxu0 %vm43_vm0, %v7577_v2  ;;  %v1739_v6 = vld [vmem:[#allocation2 + $0x7f] sm:$0xff] }
 0x100   :  { %5965 = vmatmul.mubr.msk.f32.vlgmr.msra.gmra.mrb[0].mxu1 %vm43_vm0, %v7397_v24  ;;  %6297 = vmatmul.mubr.msk.f32.gmra.mrb[8].mxu0 %vm43_vm0, %v3812_v17  ;;  %v3816_v24 = vld [vmem:[#allocation2 + $0x108] sm:$0xff]  ;;  %v4263_v17 = vld [vmem:[#allocation2 + $0x12] sm:$0xff] }
 0x101   :  { %5967 = vmatprep.mubr.msk.f32.mxu1 %vm43_vm0, %v1505_v15  ;;  %6299 = vmatprep.mubr.msk.f32.mxu0 %vm43_vm0, %v7585_v18  ;;  %v4512_v15 = vld [vmem:[#allocation6 + $0x270] sm:$0xff] }
 0x102   :  { %6495 = vmatpush3.bf16.msra.mxu1 %v7524_v31  ;;  %v4511_v31 = vld [vmem:[#allocation6 + $0x268] sm:$0xff] }
 0x103   :  { %6497 = vmatprep.subr.bf16.mxu1 %v6496_v9  ;;  %v7632_v41 = vpack.c.bf16 %v4511_v31, %v4510_v25  ;;  %v1965_v25 = vld [vmem:[#allocation2 + $0x30] sm:$0xff]  ;;  %v7717_v31 = vld [vmem:[#allocation2 + $0xda] sm:$0xff] }
 0x104   :  { %5968 = vmatmul.mubr.msk.f32.gmra.mrb[2].mxu1 %vm43_vm0, %v7405_v33  ;;  %6300 = vmatmul.mubr.msk.f32.gmra.mrb[10].mxu0 %vm43_vm0, %v3814_v22  ;;  %v3818_v33 = vld [vmem:[#allocation2 + $0x130] sm:$0xff] }
 0x105   :  { %5970 = vmatprep.mubr.msk.f32.mxu1 %vm43_vm0, %v1507_v14  ;;  %6302 = vmatprep.mubr.msk.f32.mxu0 %vm43_vm0, %v7594_v23  ;;  %v4740_v14 = vld [vmem:[#allocation6 + $0x280] sm:$0xff] }
 0x106   :  { %6499 = vmatpush3.bf16.msra.mxu1 %v6496_v9  ;;  %v4513_v9 = vld [vmem:[#allocation6 + $0x278] sm:$0xff] }
 0x107   :  { %6501 = vmatprep.subr.bf16.mxu1 %v7596_v20  ;;  %v6592_v22 = vpack.c.bf16 %v4513_v9, %v4512_v15  ;;  %v2199_v15 = vld [vmem:[#allocation2 + $0x81] sm:$0xff]  ;;  %v4507_v9 = vld [vmem:[#allocation2 + $0x12b] sm:$0xff] }
 0x108   :  { %5971 = vmatmul.mubr.msk.f32.gmra.mrb[4].mxu1 %vm43_vm0, %v7414_v36  ;;  %6303 = vmatmul.mubr.msk.f32.gmra.mrb[12].mxu0 %vm43_vm0, %v3816_v24  ;;  %v4034_v36 = vld [vmem:[#allocation2 + $0x19] sm:$0xff] }
 0x109   :  { %5973 = vmatprep.mubr.msk.f32.mxu1 %vm43_vm0, %v1509_v27  ;;  %6305 = vmatprep.mubr.msk.f32.mxu0 %vm43_vm0, %v7604_v29  ;;  %v1745_v24 = vld [vmem:[#allocation2 + $0xf7] sm:$0xff]  ;;  %v4267_v27 = vld [vmem:[#allocation2 + $0x62] sm:$0xff] }
 0x10c   :  { %5974 = vmatmul.mubr.msk.f32.gmra.mrb[6].mxu1 %vm43_vm0, %v7424_v39  ;;  %6306 = vmatmul.mubr.msk.f32.gmra.mrb[14].mxu0 %vm43_vm0, %v3818_v33  ;;  %v4036_v39 = vld [vmem:[#allocation2 + $0x41] sm:$0xff] }
 0x10d   :  { %5976 = vmatprep.mubr.msk.f32.mxu1 %vm43_vm0, %v1511_v30  ;;  %6316 = vmatprep.mubr.msk.f32.mxu0 %vm43_vm0, %v7613_v28  ;;  %v1747_v30 = vld [vmem:[#allocation2 + $0x11f] sm:$0xff] }
 0x110   :  { %5977 = vmatmul.mubr.msk.f32.gmra.mrb[8].mxu1 %vm43_vm0, %v7433_v44  ;;  %6317 = vmatmul.mubr.msk.f32.vlgmr.msra.gmra.mrb[0].mxu0 %vm43_vm0, %v4034_v36  ;;  %v4038_v44 = vld [vmem:[#allocation2 + $0x69] sm:$0xff]  ;;  %v7709_v36 = vld [vmem:[#allocation2 + $0xb2] sm:$0xff] }
 0x111   :  { %5979 = vmatprep.mubr.msk.f32.mxu1 %vm43_vm0, %v1513_v35  ;;  %6583 = vmatpush3.bf16.msra.mxu0 %v7560_v57  ;;  %v2211_v57 = vld [vmem:[#allocation6 + $0x128] sm:$0xff]  ;;  %v2212_v35 = vld [vmem:[#allocation6 + $0x130] sm:$0xff] }
 0x112   :  { %6319 = vmatprep.mubr.msk.f32.mxu0 %vm43_vm0, %v7621_v38  ;;  %6585 = vmatprep.subr.bf16.mxu0 %v6584_v32  ;;  %v7668_v5 = vpack.c.bf16 %v2211_v57, %v2210_v51  ;;  %v1975_v51 = vld [vmem:[#allocation2 + $0xf8] sm:$0xff]  ;;  %v4497_v57 = vld [vmem:[#allocation2 + $0x63] sm:$0xff] }
 0x114   :  { %5980 = vmatmul.mubr.msk.f32.gmra.mrb[10].mxu1 %vm43_vm0, %v7441_v48  ;;  %6320 = vmatmul.mubr.msk.f32.gmra.mrb[2].mxu0 %vm43_vm0, %v4036_v39  ;;  %v4040_v48 = vld [vmem:[#allocation2 + $0x91] sm:$0xff] }
 0x115   :  { %5982 = vmatprep.mubr.msk.f32.mxu1 %vm43_vm0, %v1515_v34  ;;  %6322 = vmatprep.mubr.msk.f32.mxu0 %vm43_vm0, %v7630_v42  ;;  %v1967_v34 = vld [vmem:[#allocation2 + $0x58] sm:$0xff] }
 0x116   :  { %6587 = vmatpush3.bf16.msra.mxu0 %v6584_v32  ;;  %v2213_v32 = vld [vmem:[#allocation6 + $0x138] sm:$0xff] }
 0x117   :  { %6589 = vmatprep.subr.bf16.mxu0 %v7632_v41  ;;  %v6512_v39 = vpack.c.bf16 %v2213_v32, %v2212_v35 }
 0x118   :  { %5983 = vmatmul.mubr.msk.f32.gmra.mrb[12].mxu1 %vm43_vm0, %v7450_v58  ;;  %6323 = vmatmul.mubr.msk.f32.gmra.mrb[4].mxu0 %vm43_vm0, %v4038_v44  ;;  %v4042_v58 = vld [vmem:[#allocation2 + $0xb9] sm:$0xff] }
 0x119   :  { %5985 = vmatprep.mubr.msk.f32.mxu1 %vm43_vm0, %v1517_v50  ;;  %6325 = vmatprep.mubr.msk.f32.mxu0 %vm43_vm0, %v7640_v47  ;;  %v1969_v44 = vld [vmem:[#allocation2 + $0x80] sm:$0xff]  ;;  %v7734_v50 = vld [vmem:[#allocation2 + $0x12a] sm:$0xff] }
 0x11c   :  { %5986 = vmatmul.mubr.msk.f32.gmra.mrb[14].mxu1 %vm43_vm0, %v7460_v63  ;;  %6326 = vmatmul.mubr.msk.f32.gmra.mrb[6].mxu0 %vm43_vm0, %v4040_v48  ;;  %v4044_v63 = vld [vmem:[#allocation2 + $0xe1] sm:$0xff] }
 0x11d   :  { %5996 = vmatprep.mubr.msk.f32.mxu1 %vm43_vm0, %v1733_v52  ;;  %6328 = vmatprep.mubr.msk.f32.mxu0 %vm43_vm0, %v7649_v49  ;;  %v1971_v48 = vld [vmem:[#allocation2 + $0xa8] sm:$0xff]  ;;  %v4493_v52 = vld [vmem:[#allocation2 + $0x13] sm:$0xff] }
 0x120   :  { %5997 = vmatmul.mubr.msk.f32.vlgmr.msra.gmra.mrb[0].mxu1 %vm43_vm0, %v7469_v3  ;;  %6329 = vmatmul.mubr.msk.f32.gmra.mrb[8].mxu0 %vm43_vm0, %v4042_v58  ;;  %v4046_v3 = vld [vmem:[#allocation2 + $0x109] sm:$0xff] }
 0x121   :  { %5999 = vmatprep.mubr.msk.f32.mxu1 %vm43_vm0, %v1735_v55  ;;  %6331 = vmatprep.mubr.msk.f32.mxu0 %vm43_vm0, %v7657_v60  ;;  %v1973_v58 = vld [vmem:[#allocation2 + $0xd0] sm:$0xff]  ;;  %v4495_v55 = vld [vmem:[#allocation2 + $0x3b] sm:$0xff] }
 0x122   :  { %6503 = vmatpush3.bf16.msra.mxu1 %v7596_v20  ;;  %v4741_v20 = vld [vmem:[#allocation6 + $0x288] sm:$0xff] }
 0x123   :  { %6505 = vmatprep.subr.bf16.mxu1 %v6504_v56  ;;  %v7696_v33 = vpack.c.bf16 %v4741_v20, %v4740_v14  ;;  %v4728_v14 = vld [vmem:[#allocation2 + $0x6c] sm:$0xff] }
 0x124   :  { %6000 = vmatmul.mubr.msk.f32.gmra.mrb[2].mxu1 %vm43_vm0, %v7477_v11  ;;  %6332 = vmatmul.mubr.msk.f32.gmra.mrb[10].mxu0 %vm43_vm0, %v4044_v63  ;;  %v4048_v11 = vld [vmem:[#allocation2 + $0x131] sm:$0xff]  ;;  %v1977_v63 = vld [vmem:[#allocation2 + $0x120] sm:$0xff] }
 0x125   :  { %6002 = vmatprep.mubr.msk.f32.mxu1 %vm43_vm0, %v1737_v62  ;;  %6334 = vmatprep.mubr.msk.f32.mxu0 %vm43_vm0, %v7666_v1  ;;  %v4499_v62 = vld [vmem:[#allocation2 + $0x8b] sm:$0xff] }
 0x126   :  { %6507 = vmatpush3.bf16.msra.mxu1 %v6504_v56  ;;  %v6600_v56 = vpack.c.bf16 %v4743_v46, %v4742_v53  ;;  %v4729_v20 = vld [vmem:[#allocation2 + $0x8c] sm:$0xff] }
 0x127   :  { %6509 = vmatprep.subr.bf16.mxu1 %v7668_v5 }
 0x128   :  { %6003 = vmatmul.mubr.msk.f32.gmra.mrb[4].mxu1 %vm43_vm0, %v7486_v19  ;;  %6335 = vmatmul.mubr.msk.f32.gmra.mrb[12].mxu0 %vm43_vm0, %v4046_v3  ;;  %v4264_v19 = vld [vmem:[#allocation2 + $0x1a] sm:$0xff] }
 0x129   :  { %6005 = vmatprep.mubr.msk.f32.mxu1 %vm43_vm0, %v1739_v6  ;;  %6337 = vmatprep.mubr.msk.f32.mxu0 %vm43_vm0, %v7676_v10  ;;  %v4501_v3 = vld [vmem:[#allocation2 + $0xb3] sm:$0xff]  ;;  %v4502_v6 = vld [vmem:[#allocation2 + $0xbb] sm:$0xff] }
 0x12c   :  { %6006 = vmatmul.mubr.msk.f32.gmra.mrb[6].mxu1 %vm43_vm0, %v7496_v26  ;;  %6338 = vmatmul.mubr.msk.f32.gmra.mrb[14].mxu0 %vm43_vm0, %v4048_v11  ;;  %v4266_v26 = vld [vmem:[#allocation2 + $0x42] sm:$0xff] }
 0x12d   :  { %6008 = vmatprep.mubr.msk.f32.mxu1 %vm43_vm0, %v1741_v12  ;;  %6348 = vmatprep.mubr.msk.f32.mxu0 %vm43_vm0, %v4263_v17  ;;  %v4503_v11 = vld [vmem:[#allocation2 + $0xdb] sm:$0xff]  ;;  %v4504_v12 = vld [vmem:[#allocation2 + $0xe3] sm:$0xff] }
 0x12e   :  { %v4505_v17 = vld [vmem:[#allocation2 + $0x103] sm:$0xff] }
 0x130   :  { %6009 = vmatmul.mubr.msk.f32.gmra.mrb[8].mxu1 %vm43_vm0, %v7505_v16  ;;  %6349 = vmatmul.mubr.msk.f32.vlgmr.msra.gmra.mrb[0].mxu0 %vm43_vm0, %v4264_v19  ;;  %v4268_v16 = vld [vmem:[#allocation2 + $0x6a] sm:$0xff]  ;;  %v4723_v19 = vld [vmem:[#allocation2 + $0x14] sm:$0xff] }
 0x131   :  { %6011 = vmatprep.mubr.msk.f32.mxu1 %vm43_vm0, %v1743_v59  ;;  %6591 = vmatpush3.bf16.msra.mxu0 %v7632_v41  ;;  %v7726_v41 = vld [vmem:[#allocation2 + $0x102] sm:$0xff] }
 0x132   :  { %6351 = vmatprep.mubr.msk.f32.mxu0 %vm43_vm0, %v4265_v7  ;;  %6593 = vmatprep.subr.bf16.mxu0 %v6592_v22  ;;  %v4725_v59 = vld [vmem:[#allocation2 + $0x3c] sm:$0xff]  ;;  %v4726_v7 = vld [vmem:[#allocation2 + $0x44] sm:$0xff] }
 0x134   :  { %6012 = vmatmul.mubr.msk.f32.gmra.mrb[10].mxu1 %vm43_vm0, %v7513_v43  ;;  %6352 = vmatmul.mubr.msk.f32.gmra.mrb[2].mxu0 %vm43_vm0, %v4266_v26  ;;  %v4270_v43 = vld [vmem:[#allocation2 + $0x92] sm:$0xff] }
 0x135   :  { %6014 = vmatprep.mubr.msk.f32.mxu1 %vm43_vm0, %v1745_v24  ;;  %6354 = vmatprep.mubr.msk.f32.mxu0 %vm43_vm0, %v4267_v27  ;;  %v4730_v26 = vld [vmem:[#allocation2 + $0x94] sm:$0xff]  ;;  %v4732_v27 = vld [vmem:[#allocation2 + $0xbc] sm:$0xff] }
 0x136   :  { %6595 = vmatpush3.bf16.msra.mxu0 %v6592_v22  ;;  %v4727_v22 = vld [vmem:[#allocation2 + $0x64] sm:$0xff]  ;;  %v4731_v24 = vld [vmem:[#allocation2 + $0xb4] sm:$0xff] }
 0x137   :  { %6597 = vmatprep.subr.bf16.mxu0 %v7696_v33 }
 0x138   :  { %6015 = vmatmul.mubr.msk.f32.gmra.mrb[12].mxu1 %vm43_vm0, %v7522_v0  ;;  %6355 = vmatmul.mubr.msk.f32.gmra.mrb[4].mxu0 %vm43_vm0, %v4268_v16  ;;  %v4272_v0 = vld [vmem:[#allocation2 + $0xba] sm:$0xff]  ;;  %v4734_v16 = vld [vmem:[#allocation2 + $0xe4] sm:$0xff] }
 0x139   :  { %6017 = vmatprep.mubr.msk.f32.mxu1 %vm43_vm0, %v1747_v30  ;;  %6357 = vmatprep.mubr.msk.f32.mxu0 %vm43_vm0, %v4269_v37  ;;  %v4735_v30 = vld [vmem:[#allocation2 + $0x104] sm:$0xff]  ;;  %v4736_v37 = vld [vmem:[#allocation2 + $0x10c] sm:$0xff] }
 0x13c   :  { %6018 = vmatmul.mubr.msk.f32.gmra.mrb[14].mxu1 %vm43_vm0, %v7532_v45  ;;  %6358 = vmatmul.mubr.msk.f32.gmra.mrb[6].mxu0 %vm43_vm0, %v4270_v43  ;;  %v4274_v45 = vld [vmem:[#allocation2 + $0xe2] sm:$0xff] }
 0x13d   :  { %6028 = vmatprep.mubr.msk.f32.mxu1 %vm43_vm0, %v1963_v21  ;;  %6360 = vmatprep.mubr.msk.f32.mxu0 %vm43_vm0, %v7709_v36  ;;  %v2437_v43 = vld [vmem:[#allocation2 + $0x122] sm:$0xff]  ;;  %v4737_v21 = vld [vmem:[#allocation2 + $0x12c] sm:$0xff] }
 0x140   :  { %6029 = vmatmul.mubr.msk.f32.vlgmr.msra.gmra.mrb[0].mxu1 %vm43_vm0, %v7541_v40  ;;  %6361 = vmatmul.mubr.msk.f32.gmra.mrb[8].mxu0 %vm43_vm0, %v4272_v0  ;;  %v4276_v40 = vld [vmem:[#allocation2 + $0x10a] sm:$0xff] }
 0x141   :  { %6031 = vmatprep.mubr.msk.f32.mxu1 %vm43_vm0, %v1965_v25  ;;  %6363 = vmatprep.mubr.msk.f32.mxu0 %vm43_vm0, %v7717_v31 }
 0x142   :  { %6511 = vmatpush3.bf16.msra.mxu1 %v7668_v5  ;;  %v2193_v5 = vld [vmem:[#allocation2 + $0x9] sm:$0xff] }
 0x143   :  { %6513 = vmatprep.subr.bf16.mxu1 %v6512_v39 }
 0x144   :  { %6032 = vmatmul.mubr.msk.f32.gmra.mrb[2].mxu1 %vm43_vm0, %v7549_v54  ;;  %6364 = vmatmul.mubr.msk.f32.gmra.mrb[10].mxu0 %vm43_vm0, %v4274_v45  ;;  %v4278_v54 = vld [vmem:[#allocation2 + $0x132] sm:$0xff] }
 0x145   :  { %6034 = vmatprep.mubr.msk.f32.mxu1 %vm43_vm0, %v1967_v34  ;;  %6366 = vmatprep.mubr.msk.f32.mxu0 %vm43_vm0, %v7726_v41  ;;  %v5007_v34 = vld [vmem:[%s7850_s2] ss:$0 sm:$0xff]  ;;  %s7027_s2 = smov [#allocation8]  }
 0x146   :  { %6515 = vmatpush3.bf16.msra.mxu1 %v6512_v39  ;;  %s4994_s11 = sshll.u32 %s7027_s2, 4  ;;  %s4995_s11 = int_to_ptr.vmem [resolvable:$true] %s4994_s11 }
 0x147   :  { %6604 = vmatprep.subr.bf16.mxu1 %v7142_v8  ;;  %s6994_s12 = scalar_lea.vmem %s4995_s11, 512  ;;  %p6999_p3 = scmp.lt.s32.totalorder %s4995_s11, %s4995_s11 }
 0x148   :  { %6035 = vmatmul.mubr.msk.f32.gmra.mrb[4].mxu1 %vm43_vm0, %v7558_v61  ;;  %6367 = vmatmul.mubr.msk.f32.gmra.mrb[12].mxu0 %vm43_vm0, %v4276_v40  ;;  %v4494_v61 = vld [vmem:[#allocation2 + $0x1b] sm:$0xff]  ;;  %p6995_p2 = scmp.ne.s32.totalorder %s4995_s11, %s6994_s12  ;;  %p7000_p4 = scmp.lt.s32.totalorder %s6994_s12, %s6994_s12 }
 0x149   :  { %6037 = vmatprep.mubr.msk.f32.mxu1 %vm43_vm0, %v1969_v44  ;;  %6369 = vmatprep.mubr.msk.f32.mxu0 %vm43_vm0, %v7734_v50 }
 0x14a   :  { %p7001_p5 = por %p7000_p4, %p6999_p3 }
 0x14c   :  { %6038 = vmatmul.mubr.msk.f32.gmra.mrb[6].mxu1 %vm43_vm0, %v7568_v4  ;;  %6370 = vmatmul.mubr.msk.f32.gmra.mrb[14].mxu0 %vm43_vm0, %v4278_v54  ;;  %v4496_v4 = vld [vmem:[#allocation2 + $0x43] sm:$0xff]  ;;  %p7002_p6 = pnand %p7001_p5, %p6995_p2 }
 0x14d   :  { %6040 = vmatprep.mubr.msk.f32.mxu1 %vm43_vm0, %v1971_v48  ;;  %6380 = vmatprep.mubr.msk.f32.mxu0 %vm43_vm0, %v4493_v52 }
 0x150   :  { %6041 = vmatmul.mubr.msk.f32.gmra.mrb[8].mxu1 %vm43_vm0, %v7577_v2  ;;  %6381 = vmatmul.mubr.msk.f32.vlgmr.msra.gmra.mrb[0].mxu0 %vm43_vm0, %v4494_v61  ;;  %v4498_v2 = vld [vmem:[#allocation2 + $0x6b] sm:$0xff] }
 0x151   :  { %6043 = vmatprep.mubr.msk.f32.mxu1 %vm43_vm0, %v1973_v58  ;;  %6599 = vmatpush3.bf16.msra.mxu0 %v7696_v33  ;;  %v4733_v33 = vld [vmem:[#allocation2 + $0xdc] sm:$0xff] }
 0x152   :  { %6383 = vmatprep.mubr.msk.f32.mxu0 %vm43_vm0, %v4495_v55  ;;  %6601 = vmatprep.subr.bf16.mxu0 %v6600_v56 }
 0x154   :  { %6044 = vmatmul.mubr.msk.f32.gmra.mrb[10].mxu1 %vm43_vm0, %v7585_v18  ;;  %6384 = vmatmul.mubr.msk.f32.gmra.mrb[2].mxu0 %vm43_vm0, %v4496_v4  ;;  %v4500_v18 = vld [vmem:[#allocation2 + $0x93] sm:$0xff] }
 0x155   :  { %6046 = vmatprep.mubr.msk.f32.mxu1 %vm43_vm0, %v1975_v51  ;;  %6386 = vmatprep.mubr.msk.f32.mxu0 %vm43_vm0, %v4497_v57 }
 0x156   :  { %6603 = vmatpush3.bf16.msra.mxu0 %v6600_v56 }
 0x158   :  { %6047 = vmatmul.mubr.msk.f32.gmra.mrb[12].mxu1 %vm43_vm0, %v7594_v23  ;;  %6387 = vmatmul.mubr.msk.f32.gmra.mrb[4].mxu0 %vm43_vm0, %v4498_v2  ;;  %v2195_v23 = vld [vmem:[#allocation2 + $0x31] sm:$0xff] }
 0x159   :  { %6049 = vmatprep.mubr.msk.f32.mxu1 %vm43_vm0, %v1977_v63  ;;  %6389 = vmatprep.mubr.msk.f32.mxu0 %vm43_vm0, %v4499_v62 }
 0x15c   :  { %6050 = vmatmul.mubr.msk.f32.gmra.mrb[14].mxu1 %vm43_vm0, %v7604_v29  ;;  %6390 = vmatmul.mubr.msk.f32.gmra.mrb[6].mxu0 %vm43_vm0, %v4500_v18  ;;  %v2197_v29 = vld [vmem:[#allocation2 + $0x59] sm:$0xff] }
 0x15d   :  { %6060 = vmatprep.mubr.msk.f32.mxu1 %vm43_vm0, %v2193_v5  ;;  %6392 = vmatprep.mubr.msk.f32.mxu0 %vm43_vm0, %v4501_v3 }
 0x160   :  { %6061 = vmatmul.mubr.msk.f32.vlgmr.msra.gmra.mrb[0].mxu1 %vm43_vm0, %v7613_v28  ;;  %6393 = vmatmul.mubr.msk.f32.gmra.mrb[8].mxu0 %vm43_vm0, %v4502_v6  ;;  %v4506_v28 = vld [vmem:[#allocation2 + $0x10b] sm:$0xff] }
 0x161   :  { %6063 = vmatprep.mubr.msk.f32.mxu1 %vm43_vm0, %v2195_v23  ;;  %6395 = vmatprep.mubr.msk.f32.mxu0 %vm43_vm0, %v4503_v11 }
 0x162   :  { %6606 = vmatpush3.bf16.msra.mxu1 %v7142_v8  ;;  %v4508_v8 = vld [vmem:[#allocation2 + $0x133] sm:$0xff] }
 0x163   :  { %6605 = vmatprep.subr.bf16.mxu1 %v7144_v13 }
 0x164   :  { %6064 = vmatmul.mubr.msk.f32.gmra.mrb[2].mxu1 %vm43_vm0, %v7621_v38  ;;  %6396 = vmatmul.mubr.msk.f32.gmra.mrb[10].mxu0 %vm43_vm0, %v4504_v12  ;;  %v2201_v38 = vld [vmem:[#allocation2 + $0xa9] sm:$0xff] }
 0x165   :  { %6066 = vmatprep.mubr.msk.f32.mxu1 %vm43_vm0, %v2197_v29  ;;  %6398 = vmatprep.mubr.msk.f32.mxu0 %vm43_vm0, %v4505_v17 }
 0x166   :  { %6607 = vmatpush3.bf16.msra.mxu1 %v7144_v13  ;;  %v4724_v13 = vld [vmem:[#allocation2 + $0x1c] sm:$0xff] }
 0x168   :  { %6067 = vmatmul.mubr.msk.f32.gmra.mrb[4].mxu1 %vm43_vm0, %v7630_v42  ;;  %6399 = vmatmul.mubr.msk.f32.gmra.mrb[12].mxu0 %vm43_vm0, %v4506_v28  ;;  %v2203_v42 = vld [vmem:[#allocation2 + $0xd1] sm:$0xff] }
 0x169   :  { %6069 = vmatprep.mubr.msk.f32.mxu1 %vm43_vm0, %v2199_v15  ;;  %6401 = vmatprep.mubr.msk.f32.mxu0 %vm43_vm0, %v4507_v9 }
 0x16c   :  { %6070 = vmatmul.mubr.msk.f32.gmra.mrb[6].mxu1 %vm43_vm0, %v7640_v47  ;;  %6402 = vmatmul.mubr.msk.f32.gmra.mrb[14].mxu0 %vm43_vm0, %v4508_v8  ;;  %v2205_v47 = vld [vmem:[#allocation2 + $0xf9] sm:$0xff] }
 0x16d   :  { %6072 = vmatprep.mubr.msk.f32.mxu1 %vm43_vm0, %v2201_v38  ;;  %6412 = vmatprep.mubr.msk.f32.mxu0 %vm43_vm0, %v4723_v19 }
 0x170   :  { %6073 = vmatmul.mubr.msk.f32.gmra.mrb[8].mxu1 %vm43_vm0, %v7649_v49  ;;  %6413 = vmatmul.mubr.msk.f32.vlgmr.msra.gmra.mrb[0].mxu0 %vm43_vm0, %v4724_v13  ;;  %v2207_v49 = vld [vmem:[#allocation2 + $0x121] sm:$0xff] }
 0x171   :  { %6075 = vmatprep.mubr.msk.f32.mxu1 %vm43_vm0, %v2203_v42  ;;  %6415 = vmatprep.mubr.msk.f32.mxu0 %vm43_vm0, %v4725_v59 }
 0x174   :  { %6076 = vmatmul.mubr.msk.f32.gmra.mrb[10].mxu1 %vm43_vm0, %v7657_v60  ;;  %6416 = vmatmul.mubr.msk.f32.gmra.mrb[2].mxu0 %vm43_vm0, %v4726_v7  ;;  %v2431_v60 = vld [vmem:[#allocation2 + $0xaa] sm:$0xff] }
 0x175   :  { %6078 = vmatprep.mubr.msk.f32.mxu1 %vm43_vm0, %v2205_v47  ;;  %6418 = vmatprep.mubr.msk.f32.mxu0 %vm43_vm0, %v4727_v22 }
 0x178   :  { %6079 = vmatmul.mubr.msk.f32.gmra.mrb[12].mxu1 %vm43_vm0, %v7666_v1  ;;  %6419 = vmatmul.mubr.msk.f32.gmra.mrb[4].mxu0 %vm43_vm0, %v4728_v14  ;;  %v2433_v1 = vld [vmem:[#allocation2 + $0xd2] sm:$0xff] }
 0x179   :  { %6081 = vmatprep.mubr.msk.f32.mxu1 %vm43_vm0, %v2207_v49  ;;  %6421 = vmatprep.mubr.msk.f32.mxu0 %vm43_vm0, %v4729_v20 }
 0x17c   :  { %6082 = vmatmul.mubr.msk.f32.gmra.mrb[14].mxu1 %vm43_vm0, %v7676_v10  ;;  %6422 = vmatmul.mubr.msk.f32.gmra.mrb[6].mxu0 %vm43_vm0, %v4730_v26  ;;  %v2435_v10 = vld [vmem:[#allocation2 + $0xfa] sm:$0xff] }
 0x17d   :  { %6104 = vmatprep.mubr.msk.f32.mxu1 %vm43_vm0, %v2431_v60  ;;  %6424 = vmatprep.mubr.msk.f32.mxu0 %vm43_vm0, %v4731_v24 }
 0x180   :  { %6105 = vmatmul.mubr.msk.f32.vlgmr.msra.gmra.mrb[8].mxu1 %vm43_vm0, %v7709_v36  ;;  %6425 = vmatmul.mubr.msk.f32.gmra.mrb[8].mxu0 %vm43_vm0, %v4732_v27  ;;  %v4738_v36 = vld [vmem:[#allocation2 + $0x134] sm:$0xff] }
 0x181   :  { %6107 = vmatprep.mubr.msk.f32.mxu1 %vm43_vm0, %v2433_v1  ;;  %6427 = vmatprep.mubr.msk.f32.mxu0 %vm43_vm0, %v4733_v33 }
 0x184   :  { %6108 = vmatmul.mubr.msk.f32.gmra.mrb[10].mxu1 %vm43_vm0, %v7717_v31  ;;  %6428 = vmatmul.mubr.msk.f32.gmra.mrb[10].mxu0 %vm43_vm0, %v4734_v16 }
 0x185   :  { %6110 = vmatprep.mubr.msk.f32.mxu1 %vm43_vm0, %v2435_v10  ;;  %6430 = vmatprep.mubr.msk.f32.mxu0 %vm43_vm0, %v4735_v30 }
 0x188   :  { %6111 = vmatmul.mubr.msk.f32.gmra.mrb[12].mxu1 %vm43_vm0, %v7726_v41  ;;  %6431 = vmatmul.mubr.msk.f32.gmra.mrb[12].mxu0 %vm43_vm0, %v4736_v37 }
 0x189   :  { %6113 = vmatprep.mubr.msk.f32.mxu1 %vm43_vm0, %v2437_v43  ;;  %6433 = vmatprep.mubr.msk.f32.mxu0 %vm43_vm0, %v4737_v21 }
 0x18c   :  { %6114 = vmatmul.mubr.msk.f32.gmra.mrb[14].mxu1 %vm43_vm0, %v7734_v50  ;;  %6434 = vmatmul.mubr.msk.f32.gmra.mrb[14].mxu0 %vm43_vm0, %v4738_v36 }
 0x233   :  { %v6062_v35 = vpop.f32.mrb[0].mxu1 }
 0x234   :  { %v2328_v32 = vpop.f32.mrb[1].mxu1  ;;  %v6608_v40 = vadd.f32 %v6062_v35, %v5007_v34 }
 0x235   :  { %v6610_v44 = vadd.f32 %v5007_v34, %v2328_v32 }
 0x237   :  { %v6065_v0 = vpop.f32.mrb[2].mxu1 }
 0x238   :  { %v2338_v25 = vpop.f32.mrb[3].mxu1  ;;  %v6612_v53 = vadd.f32 %v6065_v0, %v5007_v34 }
 0x239   :  { %v6614_v46 = vadd.f32 %v5007_v34, %v2338_v25 }
 0x23b   :  { %v6068_v31 = vpop.f32.mrb[4].mxu1 }
 0x23c   :  { %v2348_v39 = vpop.f32.mrb[5].mxu1  ;;  %v6616_v4 = vadd.f32 %v6068_v31, %v5007_v34 }
 0x23d   :  { %v6618_v51 = vadd.f32 %v5007_v34, %v2348_v39 }
 0x23f   :  { %v6071_v45 = vpop.f32.mrb[6].mxu1 }
 0x240   :  { %v2358_v41 = vpop.f32.mrb[7].mxu1  ;;  %v6620_v18 = vadd.f32 %v6071_v45, %v5007_v34 }
 0x241   :  { %v6622_v5 = vadd.f32 %v5007_v34, %v2358_v41 }
 0x243   :  { %v6414_v54 = vpop.f32.mrb[0].mxu0 }
 0x244   :  { %v6609_v48 = vadd.f32 %v6608_v40, %v6414_v54  ;;  %v4858_v52 = vpop.f32.mrb[1].mxu0 }
 0x245   :  { %v6611_v50 = vadd.f32 %v6610_v44, %v4858_v52 }
 0x247   :  { %v6417_v61 = vpop.f32.mrb[2].mxu0  ;;  %4953 = vxpose.xlu0.b32.start [1/16] (narrow) %v6611_v50, 32 }
 0x248   :  { %v6613_v58 = vadd.f32 %v6612_v53, %v6417_v61  ;;  %v4868_v55 = vpop.f32.mrb[3].mxu0 }
 0x249   :  { %v6615_v56 = vadd.f32 %v6614_v46, %v4868_v55 }
 0x24b   :  { %v6420_v57 = vpop.f32.mrb[4].mxu0  ;;  %4954 = vxpose.xlu0.b32.cont [2/16] (narrow) %v6609_v48, 32 }
 0x24c   :  { %v6617_v2 = vadd.f32 %v6616_v4, %v6420_v57  ;;  %v4878_v63 = vpop.f32.mrb[5].mxu0 }
 0x24d   :  { %v6619_v62 = vadd.f32 %v6618_v51, %v4878_v63 }
 0x24f   :  { %v6423_v3 = vpop.f32.mrb[6].mxu0  ;;  %4955 = vxpose.xlu0.b32.cont [3/16] (narrow) %v6615_v56, 32 }
 0x250   :  { %v6621_v6 = vadd.f32 %v6620_v18, %v6423_v3  ;;  %v4888_v23 = vpop.f32.mrb[7].mxu0 }
 0x251   :  { %v6623_v11 = vadd.f32 %v6622_v5, %v4888_v23 }
 0x253   :  { %v6106_v12 = vpop.f32.mrb[8].mxu1  ;;  %v6426_v17 = vpop.f32.mrb[8].mxu0  ;;  %4956 = vxpose.xlu0.b32.cont [4/16] (narrow) %v6613_v58, 32 }
 0x254   :  { %v6624_v29 = vadd.f32 %v6106_v12, %v5007_v34  ;;  %v2598_v28 = vpop.f32.mrb[9].mxu1  ;;  %v4898_v9 = vpop.f32.mrb[9].mxu0 }
 0x255   :  { %v6626_v15 = vadd.f32 %v5007_v34, %v2598_v28 }
 0x256   :  { %v6625_v8 = vadd.f32 %v6624_v29, %v6426_v17 }
 0x257   :  { %v6627_v38 = vadd.f32 %v6626_v15, %v4898_v9  ;;  %v6109_v19 = vpop.f32.mrb[10].mxu1  ;;  %v6429_v42 = vpop.f32.mrb[10].mxu0  ;;  %4957 = vxpose.xlu0.b32.cont [5/16] (narrow) %v6619_v62, 32 }
 0x258   :  { %v6628_v13 = vadd.f32 %v6109_v19, %v5007_v34  ;;  %v2608_v59 = vpop.f32.mrb[11].mxu1  ;;  %v4908_v47 = vpop.f32.mrb[11].mxu0 }
 0x259   :  { %v6630_v7 = vadd.f32 %v5007_v34, %v2608_v59 }
 0x25a   :  { %v6629_v22 = vadd.f32 %v6628_v13, %v6429_v42 }
 0x25b   :  { %v6631_v14 = vadd.f32 %v6630_v7, %v4908_v47  ;;  %v6112_v49 = vpop.f32.mrb[12].mxu1  ;;  %v6432_v26 = vpop.f32.mrb[12].mxu0  ;;  %4958 = vxpose.xlu0.b32.cont [6/16] (narrow) %v6617_v2, 32 }
 0x25c   :  { %v6632_v20 = vadd.f32 %v6112_v49, %v5007_v34  ;;  %v2618_v60 = vpop.f32.mrb[13].mxu1  ;;  %v4918_v27 = vpop.f32.mrb[13].mxu0 }
 0x25d   :  { %v6634_v24 = vadd.f32 %v5007_v34, %v2618_v60 }
 0x25e   :  { %v6633_v1 = vadd.f32 %v6632_v20, %v6432_v26 }
 0x25f   :  { %v6635_v33 = vadd.f32 %v6634_v24, %v4918_v27  ;;  %v6115_v16 = vpop.f32.mrb[14].mxu1  ;;  %v6435_v30 = vpop.f32.mrb[14].mxu0  ;;  %4959 = vxpose.xlu0.b32.cont [7/16] (narrow) %v6623_v11, 32 }
 0x260   :  { %v6636_v10 = vadd.f32 %v6115_v16, %v5007_v34  ;;  %v2628_v37 = vpop.f32.mrb[15].mxu1  ;;  %v4928_v21 = vpop.f32.mrb[15].mxu0 }
 0x261   :  { %v6638_v43 = vadd.f32 %v5007_v34, %v2628_v37 }
 0x262   :  { %v6637_v36 = vadd.f32 %v6636_v10, %v6435_v30 }
 0x263   :  { %v6639_v35 = vadd.f32 %v6638_v43, %v4928_v21  ;;  %4960 = vxpose.xlu0.b32.cont [8/16] (narrow) %v6621_v6, 32 }
 0x267   :  { %4961 = vxpose.xlu0.b32.cont [9/16] (narrow) %v6627_v38, 32 }
 0x26b   :  { %4962 = vxpose.xlu0.b32.cont [10/16] (narrow) %v6625_v8, 32 }
 0x26f   :  { %4963 = vxpose.xlu0.b32.cont [11/16] (narrow) %v6631_v14, 32 }
 0x273   :  { %4964 = vxpose.xlu0.b32.cont [12/16] (narrow) %v6629_v22, 32 }
 0x277   :  { %4965 = vxpose.xlu0.b32.cont [13/16] (narrow) %v6635_v33, 32 }
 0x27b   :  { %4966 = vxpose.xlu0.b32.cont [14/16] (narrow) %v6633_v1, 32 }
 0x27f   :  { %4967 = vxpose.xlu0.b32.cont [15/16] (narrow) %v6639_v35, 32 }
 0x283   :  { %4968 = vxpose.xlu0.b32.end [16/16] (narrow) %v6637_v36, 32 }
 0x2c7   :  { %v4969_v32 = vpop.trf.xlu0 }
 0x2c8   :  { %4985 = vst [vmem:[#allocation8] sm:$0xff] %v4969_v32 }
 0x2cb   :  { %v4970_v0 = vpop.trf.xlu0 }
 0x2cc   :  { %4986 = vst [vmem:[#allocation8 + $0x8] sm:$0xff] %v4970_v0 }
 0x2cf   :  { %v4971_v25 = vpop.trf.xlu0 }
 0x2d0   :  { %4987 = vst [vmem:[#allocation8 + $0x10] sm:$0xff] %v4971_v25 }
 0x2d3   :  { %v4972_v31 = vpop.trf.xlu0 }
 0x2d4   :  { %4988 = vst [vmem:[#allocation8 + $0x18] sm:$0xff] %v4972_v31 }
 0x2d5   :  { %7005 = shalt.err (!%p7002_p6)
}
 0x2d6   :  { %s7006_s15 = scalar_lea.hbm %s7851_s3, 512 }
 0x2d7   :  { %p7007_p7 = scmp.ne.s32.totalorder %s7851_s3, %s7006_s15  ;;  %p7010_p8 = scmp.lt.u32.totalorder %s7006_s15, %s7851_s3 }
 0x2d9   :  { %p7012_p9 = pnand %p7010_p8, %p7007_p7 }
 0x2db   :  { %7015 = shalt.err (!%p7012_p9)
}
 0x2dc   :  { %5000 = dma.vmem_to_hbm [thread:$0]  %s4995_s11, 512, %s7851_s3, [#allocation5], %s7023_s22, %s7023_s22, %s7024_s23  }
 0x2dd   :  { %7020 = dma.done.wait [#allocation5], 512  }
 0x2de   :  { %7021 = vsyncadd [#allocation5], 4294966784 }
 0x2df   :  { %5004 = vsyncpa [#allocation4], 1 }
 0x2e0   :  { %5005 = vsyncpa [#allocation7], 1 }
 0x2e1   :  { %5006 = vsyncpa [#allocation5], 1 }

</bundles_post_ra>
